<compile_context>
chip_gen: v7x
topology: tpu7x:2x2x1
jax: 0.10.0
libtpu: 0.0.40
codegen_flags: <defaults>
</compile_context>

<pallas_src>
import functools

import jax
import jax.numpy as jnp
from jax import lax
from jax.experimental import pallas as pl
from jax.experimental.pallas import tpu as pltpu


def _bottleneck_kernel(x_ref, halo_ref, w1_ref, s1_ref, b1_ref,
                       w2_ref, s2_ref, b2_ref,
                       w3_ref, s3_ref, b3_ref,
                       out_ref, *, TH, W, Cin, Cmid, Cout):
    f32 = jnp.float32
    bf16 = jnp.bfloat16
    t = pl.program_id(1)
    num_t = pl.num_programs(1)

    x2d = x_ref[0].reshape(TH * W, Cin)              # bf16, the TH "main" rows
    halo2d = halo_ref[0, 0].reshape(2 * W, Cin)      # bf16, row above + row below

    # ---- conv1 (1x1) + bn1 + relu : one matmul over main + halo rows ----
    xin = jnp.concatenate([x2d, halo2d], axis=0)                       # [(TH+2)*W, Cin]
    h1 = jnp.dot(xin, w1_ref[...], preferred_element_type=f32)         # [(TH+2)*W, Cmid]
    h1 = jnp.maximum(h1 * s1_ref[...] + b1_ref[...], 0.0)

    # Halo rows outside the image must contribute zero to conv2 (zero padding),
    # not h1(0) = relu(b1), so mask them based on the tile index.
    h1_top = jnp.where(t > 0, h1[TH * W:TH * W + W], 0.0)
    h1_bot = jnp.where(t + 1 < num_t, h1[TH * W + W:], 0.0)
    padded = jnp.concatenate(
        [h1_top.reshape(1, W, Cmid),
         h1[:TH * W].reshape(TH, W, Cmid),
         h1_bot.reshape(1, W, Cmid)], axis=0).astype(bf16)             # [TH+2, W, Cmid]

    # ---- conv2 (3x3, stride 1, pad 1) + bn2 + relu ----
    # Concatenate the three W-shifted taps along the contraction dim so each of
    # the 3 dh matmuls sees K = 3*Cmid (vs 9 matmuls with K = Cmid before).
    zcol = jnp.zeros((TH + 2, 1, Cmid), bf16)
    left = jnp.concatenate([zcol, padded[:, :W - 1, :]], axis=1)       # in[.., w-1, :]
    right = jnp.concatenate([padded[:, 1:, :], zcol], axis=1)          # in[.., w+1, :]
    big = jnp.concatenate([left, padded, right], axis=-1)              # [TH+2, W, 3*Cmid]

    acc = jnp.zeros((TH * W, Cmid), f32)
    for dh in range(3):
        acc += jnp.dot(big[dh:dh + TH].reshape(TH * W, 3 * Cmid), w2_ref[dh],
                       preferred_element_type=f32)
    h2 = jnp.maximum(acc * s2_ref[...] + b2_ref[...], 0.0).astype(bf16)

    # ---- conv3 (1x1) + bn3 ----
    h3 = jnp.dot(h2, w3_ref[...], preferred_element_type=f32)          # [TH*W, Cout]
    h3 = h3 * s3_ref[...] + b3_ref[...]

    # ---- residual add (downsample=None, stride=1 => identity) + relu ----
    out = jnp.maximum(h3 + x2d.astype(f32), 0.0)
    out_ref[0] = out.reshape(TH, W, Cout).astype(out_ref.dtype)


def bottleneck_forward(x_nhwc, params, *, row_tile=8):
    """x_nhwc: [N, H, W, Cin] float32. Returns [N, H, W, Cout] float32."""
    N, H, W, Cin = x_nhwc.shape
    w1, s1, b1, w2, s2, b2, w3, s3, b3 = params
    Cmid = w1.shape[1]
    Cout = w3.shape[1]
    assert Cout == Cin, "downsample=None requires inplanes == planes * expansion"
    assert W % 8 == 0, "W must be a multiple of 8 (sublane alignment)"
    TH = min(row_tile, H)
    assert H % TH == 0, "H must be divisible by the row tile"
    T = H // TH

    bf16 = jnp.bfloat16
    xb = x_nhwc.astype(bf16)
    w1b = w1.astype(bf16)
    w2b = w2.reshape(3, 3 * Cmid, Cmid).astype(bf16)   # [dh, dw*Cmid + cin, cout]
    w3b = w3.astype(bf16)

    # Pre-gather the 1-row halos for each row tile: halo[n, t, 0] = row above the
    # tile, halo[n, t, 1] = row below.  Boundary entries are placeholders (zeros);
    # the kernel masks out-of-image halo rows itself.
    xr = xb.reshape(N, T, TH, W, Cin)
    zrow = jnp.zeros((N, 1, W, Cin), bf16)
    top = jnp.concatenate([zrow, xr[:, :-1, TH - 1]], axis=1)     # [N, T, W, Cin]
    bot = jnp.concatenate([xr[:, 1:, 0], zrow], axis=1)           # [N, T, W, Cin]
    halo = jnp.stack([top, bot], axis=2)                          # [N, T, 2, W, Cin]

    kernel = functools.partial(_bottleneck_kernel,
                               TH=TH, W=W, Cin=Cin, Cmid=Cmid, Cout=Cout)

    flops = 2 * N * H * W * (Cin * Cmid + 9 * Cmid * Cmid + Cmid * Cout)
    bytes_accessed = (xb.size * 2 + halo.size * 2 + N * H * W * Cout * 4
                      + (w1b.size + w2b.size + w3b.size) * 2
                      + (s1.size + b1.size + s2.size + b2.size + s3.size + b3.size) * 4)

    const = lambda rank: (lambda n, t: (0,) * rank)

    return pl.pallas_call(
        kernel,
        out_shape=jax.ShapeDtypeStruct((N, H, W, Cout), jnp.float32),
        grid_spec=pltpu.PrefetchScalarGridSpec(
            num_scalar_prefetch=0,
            grid=(N, T),
            in_specs=[
                pl.BlockSpec((1, TH, W, Cin), lambda n, t: (n, t, 0, 0)),
                pl.BlockSpec((1, 1, 2, W, Cin), lambda n, t: (n, t, 0, 0, 0)),
                pl.BlockSpec(w1b.shape, const(2)),
                pl.BlockSpec(s1.shape, const(2)),
                pl.BlockSpec(b1.shape, const(2)),
                pl.BlockSpec(w2b.shape, const(3)),
                pl.BlockSpec(s2.shape, const(2)),
                pl.BlockSpec(b2.shape, const(2)),
                pl.BlockSpec(w3b.shape, const(2)),
                pl.BlockSpec(s3.shape, const(2)),
                pl.BlockSpec(b3.shape, const(2)),
            ],
            out_specs=pl.BlockSpec((1, TH, W, Cout), lambda n, t: (n, t, 0, 0)),
        ),
        compiler_params=pltpu.CompilerParams(
            dimension_semantics=("parallel", "parallel"),
            vmem_limit_bytes=64 * 1024 * 1024),
        cost_estimate=pl.CostEstimate(flops=int(flops), transcendentals=0,
                                      bytes_accessed=int(bytes_accessed)),
    )(xb, halo, w1b, s1, b1, w2b, s2, b2, w3b, s3, b3)


def make_params(key, inplanes, planes, base_width=64, groups=1):
    """Deterministic synthetic parameters matching Bottleneck.__init__ shapes."""
    expansion = 4
    width = int(planes * (base_width / 64.0)) * groups
    cout = planes * expansion
    eps = 1e-5
    ks = jax.random.split(key, 9)

    def bn_fold(kg, kb, c):
        gamma = jax.random.normal(kg, (c,), jnp.float32) * 0.1 + 1.0
        beta = jax.random.normal(kb, (c,), jnp.float32) * 0.1
        running_mean = jnp.zeros((c,), jnp.float32)
        running_var = jnp.ones((c,), jnp.float32)
        scale = gamma / jnp.sqrt(running_var + eps)
        bias = beta - running_mean * scale
        return scale.reshape(1, c), bias.reshape(1, c)

    # conv weights in matmul-friendly layouts:
    #   1x1 conv: [Cin, Cout];  3x3 conv: [3, 3, Cin, Cout] (HWIO)
    w1 = jax.random.normal(ks[0], (inplanes, width), jnp.float32) * 0.1
    w2 = jax.random.normal(ks[1], (3, 3, width, width), jnp.float32) * 0.1
    w3 = jax.random.normal(ks[2], (width, cout), jnp.float32) * 0.1
    s1, b1 = bn_fold(ks[3], ks[4], width)
    s2, b2 = bn_fold(ks[5], ks[6], width)
    s3, b3 = bn_fold(ks[7], ks[8], cout)
    return (w1, s1, b1, w2, s2, b2, w3, s3, b3)


def reference_forward(x_nhwc, params):
    """Pure-JAX reference (eval-mode BN folded; bf16 matmul operands like the kernel)."""
    w1, s1, b1, w2, s2, b2, w3, s3, b3 = params
    bf = lambda a: a.astype(jnp.bfloat16)
    relu = lambda v: jnp.maximum(v, 0.0)
    xb = bf(x_nhwc)
    h1 = jnp.einsum('nhwc,cd->nhwd', xb, bf(w1),
                    preferred_element_type=jnp.float32)
    h1 = relu(h1 * s1[0] + b1[0])
    h2 = lax.conv_general_dilated(
        bf(h1), bf(w2), window_strides=(1, 1), padding='SAME',
        dimension_numbers=('NHWC', 'HWIO', 'NHWC'),
        preferred_element_type=jnp.float32)
    h2 = relu(h2 * s2[0] + b2[0])
    h3 = jnp.einsum('nhwc,cd->nhwd', bf(h2), bf(w3),
                    preferred_element_type=jnp.float32) * s3[0] + b3[0]
    return relu(h3 + xb.astype(jnp.float32))


if __name__ == "__main__":
    # Small shapes: inplanes=16, planes=4 (width=4, out=planes*4=16),
    # stride=1, downsample=None -> identity residual is valid.
    N, Cin, Hs, Ws = 2, 16, 16, 16
    planes = 4

    key = jax.random.PRNGKey(0)
    kx, kp = jax.random.split(key)
    x_nchw = jax.random.normal(kx, (N, Cin, Hs, Ws), jnp.float32)
    x_nhwc = jnp.transpose(x_nchw, (0, 2, 3, 1))   # NCHW -> NHWC (layout glue)

    params = make_params(kp, inplanes=Cin, planes=planes)

    out = bottleneck_forward(x_nhwc, params, row_tile=8)
    out = jax.block_until_ready(out)

    ref = jax.block_until_ready(reference_forward(x_nhwc, params))
    assert out.shape == (N, Hs, Ws, planes * 4)
    max_err = float(jnp.max(jnp.abs(out - ref)))
    assert jnp.allclose(out, ref, rtol=2e-2, atol=2e-2), max_err

    print("KERNEL_OK")
</pallas_src>

<mosaic_0001>
module attributes {stable_mosaic.version = 11 : i64} {
  func.func @_bottleneck_kernel(%arg0: i32, %arg1: i32, %arg2: memref<1x8x16x16xbf16, #tpu.memory_space<vmem>>, %arg3: memref<1x1x2x16x16xbf16, #tpu.memory_space<vmem>>, %arg4: memref<16x4xbf16, #tpu.memory_space<vmem>>, %arg5: memref<1x4xf32, #tpu.memory_space<vmem>>, %arg6: memref<1x4xf32, #tpu.memory_space<vmem>>, %arg7: memref<3x12x4xbf16, #tpu.memory_space<vmem>>, %arg8: memref<1x4xf32, #tpu.memory_space<vmem>>, %arg9: memref<1x4xf32, #tpu.memory_space<vmem>>, %arg10: memref<4x16xbf16, #tpu.memory_space<vmem>>, %arg11: memref<1x16xf32, #tpu.memory_space<vmem>>, %arg12: memref<1x16xf32, #tpu.memory_space<vmem>>, %arg13: memref<1x8x16x16xf32, #tpu.memory_space<vmem>>) attributes {dimension_semantics = [#tpu.dimension_semantics<parallel>, #tpu.dimension_semantics<parallel>], iteration_bounds = array<i64: 2, 2>, scalar_prefetch = 0 : i64, scratch_operands = 0 : i64, tpu.core_type = #tpu.core_type<tc>, window_params = [{transform_indices = @transform_0, window_bounds = array<i64: 1, 8, 16, 16>}, {transform_indices = @transform_1, window_bounds = array<i64: 1, 1, 2, 16, 16>}, {pipeline_mode = #tpu.pipeline_mode<synchronous>, transform_indices = @transform_2, window_bounds = array<i64: 16, 4>}, {pipeline_mode = #tpu.pipeline_mode<synchronous>, transform_indices = @transform_3, window_bounds = array<i64: 1, 4>}, {pipeline_mode = #tpu.pipeline_mode<synchronous>, transform_indices = @transform_4, window_bounds = array<i64: 1, 4>}, {pipeline_mode = #tpu.pipeline_mode<synchronous>, transform_indices = @transform_5, window_bounds = array<i64: 3, 12, 4>}, {pipeline_mode = #tpu.pipeline_mode<synchronous>, transform_indices = @transform_6, window_bounds = array<i64: 1, 4>}, {pipeline_mode = #tpu.pipeline_mode<synchronous>, transform_indices = @transform_7, window_bounds = array<i64: 1, 4>}, {pipeline_mode = #tpu.pipeline_mode<synchronous>, transform_indices = @transform_8, window_bounds = array<i64: 4, 16>}, {pipeline_mode = #tpu.pipeline_mode<synchronous>, transform_indices = @transform_9, window_bounds = array<i64: 1, 16>}, {pipeline_mode = #tpu.pipeline_mode<synchronous>, transform_indices = @transform_10, window_bounds = array<i64: 1, 16>}, {transform_indices = @transform_11, window_bounds = array<i64: 1, 8, 16, 16>}]} {
    %c0 = arith.constant 0 : index
    %c0_0 = arith.constant 0 : index
    %c0_1 = arith.constant 0 : index
    %c0_2 = arith.constant 0 : index
    %0 = vector.load %arg2[%c0, %c0_0, %c0_1, %c0_2] : memref<1x8x16x16xbf16, #tpu.memory_space<vmem>>, vector<1x8x16x16xbf16>
    %1 = vector.shape_cast %0 : vector<1x8x16x16xbf16> to vector<8x16x16xbf16>
    %2 = vector.shape_cast %1 : vector<8x16x16xbf16> to vector<128x16xbf16>
    %c0_3 = arith.constant 0 : index
    %c0_4 = arith.constant 0 : index
    %c0_5 = arith.constant 0 : index
    %c0_6 = arith.constant 0 : index
    %c0_7 = arith.constant 0 : index
    %3 = vector.load %arg3[%c0_3, %c0_4, %c0_5, %c0_6, %c0_7] : memref<1x1x2x16x16xbf16, #tpu.memory_space<vmem>>, vector<1x1x2x16x16xbf16>
    %4 = vector.shape_cast %3 : vector<1x1x2x16x16xbf16> to vector<2x16x16xbf16>
    %5 = vector.shape_cast %4 : vector<2x16x16xbf16> to vector<32x16xbf16>
    %6 = tpu.concatenate %2, %5 in 0 : vector<128x16xbf16>, vector<32x16xbf16> -> vector<160x16xbf16>
    %c0_8 = arith.constant 0 : index
    %c0_9 = arith.constant 0 : index
    %7 = vector.load %arg4[%c0_8, %c0_9] : memref<16x4xbf16, #tpu.memory_space<vmem>>, vector<16x4xbf16>
    %cst = arith.constant dense<0.000000e+00> : vector<160x4xf32>
    %8 = tpu.matmul %6, %7, %cst {dimension_numbers = #tpu.dot_dimension_numbers<[1], [0], [0], [1], [0, 0, 1, 1], [], []>} : vector<160x16xbf16>, vector<16x4xbf16>, vector<160x4xf32> -> vector<160x4xf32>
    %c0_10 = arith.constant 0 : index
    %c0_11 = arith.constant 0 : index
    %9 = vector.load %arg5[%c0_10, %c0_11] : memref<1x4xf32, #tpu.memory_space<vmem>>, vector<1x4xf32>
    %10 = vector.broadcast %9 : vector<1x4xf32> to vector<160x4xf32>
    %11 = arith.mulf %8, %10 : vector<160x4xf32>
    %c0_12 = arith.constant 0 : index
    %c0_13 = arith.constant 0 : index
    %12 = vector.load %arg6[%c0_12, %c0_13] : memref<1x4xf32, #tpu.memory_space<vmem>>, vector<1x4xf32>
    %13 = vector.broadcast %12 : vector<1x4xf32> to vector<160x4xf32>
    %14 = arith.addf %11, %13 : vector<160x4xf32>
    %cst_14 = arith.constant 0.000000e+00 : f32
    %15 = vector.broadcast %cst_14 : f32 to vector<160x4xf32>
    %16 = arith.maximumf %14, %15 : vector<160x4xf32>
    %c0_i32 = arith.constant 0 : i32
    %17 = arith.cmpi sgt, %arg1, %c0_i32 : i32
    %18 = vector.extract_strided_slice %16 {offsets = [128, 0], sizes = [16, 4], strides = [1, 1]} : vector<160x4xf32> to vector<16x4xf32>
    %cst_15 = arith.constant 0.000000e+00 : f32
    %19 = vector.broadcast %cst_15 : f32 to vector<16x4xf32>
    %20 = arith.select %17, %18, %19 : vector<16x4xf32>
    %c1_i32 = arith.constant 1 : i32
    %21 = arith.addi %arg1, %c1_i32 : i32
    %c2_i32 = arith.constant 2 : i32
    %22 = arith.cmpi slt, %21, %c2_i32 : i32
    %23 = vector.extract_strided_slice %16 {offsets = [144, 0], sizes = [16, 4], strides = [1, 1]} : vector<160x4xf32> to vector<16x4xf32>
    %cst_16 = arith.constant 0.000000e+00 : f32
    %24 = vector.broadcast %cst_16 : f32 to vector<16x4xf32>
    %25 = arith.select %22, %23, %24 : vector<16x4xf32>
    %26 = vector.shape_cast %20 : vector<16x4xf32> to vector<1x16x4xf32>
    %27 = vector.extract_strided_slice %16 {offsets = [0, 0], sizes = [128, 4], strides = [1, 1]} : vector<160x4xf32> to vector<128x4xf32>
    %28 = vector.shape_cast %27 : vector<128x4xf32> to vector<8x16x4xf32>
    %29 = vector.shape_cast %25 : vector<16x4xf32> to vector<1x16x4xf32>
    %30 = tpu.concatenate %26, %28, %29 in 0 : vector<1x16x4xf32>, vector<8x16x4xf32>, vector<1x16x4xf32> -> vector<10x16x4xf32>
    %31 = arith.truncf %30 : vector<10x16x4xf32> to vector<10x16x4xbf16>
    %cst_17 = arith.constant 0.000000e+00 : bf16
    %32 = vector.broadcast %cst_17 : bf16 to vector<10x1x4xbf16>
    %33 = vector.extract_strided_slice %31 {offsets = [0, 0, 0], sizes = [10, 15, 4], strides = [1, 1, 1]} : vector<10x16x4xbf16> to vector<10x15x4xbf16>
    %34 = tpu.concatenate %32, %33 in 1 : vector<10x1x4xbf16>, vector<10x15x4xbf16> -> vector<10x16x4xbf16>
    %35 = vector.extract_strided_slice %31 {offsets = [0, 1, 0], sizes = [10, 15, 4], strides = [1, 1, 1]} : vector<10x16x4xbf16> to vector<10x15x4xbf16>
    %36 = tpu.concatenate %35, %32 in 1 : vector<10x15x4xbf16>, vector<10x1x4xbf16> -> vector<10x16x4xbf16>
    %37 = tpu.concatenate %34, %31, %36 in 2 : vector<10x16x4xbf16>, vector<10x16x4xbf16>, vector<10x16x4xbf16> -> vector<10x16x12xbf16>
    %cst_18 = arith.constant 0.000000e+00 : f32
    %38 = vector.broadcast %cst_18 : f32 to vector<128x4xf32>
    %39 = vector.extract_strided_slice %37 {offsets = [0, 0, 0], sizes = [8, 16, 12], strides = [1, 1, 1]} : vector<10x16x12xbf16> to vector<8x16x12xbf16>
    %40 = vector.shape_cast %39 : vector<8x16x12xbf16> to vector<128x12xbf16>
    %c0_19 = arith.constant 0 : index
    %c0_20 = arith.constant 0 : index
    %c0_21 = arith.constant 0 : index
    %41 = vector.load %arg7[%c0_19, %c0_20, %c0_21] : memref<3x12x4xbf16, #tpu.memory_space<vmem>>, vector<1x12x4xbf16>
    %42 = vector.shape_cast %41 : vector<1x12x4xbf16> to vector<12x4xbf16>
    %cst_22 = arith.constant dense<0.000000e+00> : vector<128x4xf32>
    %43 = tpu.matmul %40, %42, %cst_22 {dimension_numbers = #tpu.dot_dimension_numbers<[1], [0], [0], [1], [0, 0, 1, 1], [], []>} : vector<128x12xbf16>, vector<12x4xbf16>, vector<128x4xf32> -> vector<128x4xf32>
    %44 = arith.addf %38, %43 : vector<128x4xf32>
    %45 = vector.extract_strided_slice %37 {offsets = [1, 0, 0], sizes = [8, 16, 12], strides = [1, 1, 1]} : vector<10x16x12xbf16> to vector<8x16x12xbf16>
    %46 = vector.shape_cast %45 : vector<8x16x12xbf16> to vector<128x12xbf16>
    %c1 = arith.constant 1 : index
    %c0_23 = arith.constant 0 : index
    %c0_24 = arith.constant 0 : index
    %47 = vector.load %arg7[%c1, %c0_23, %c0_24] : memref<3x12x4xbf16, #tpu.memory_space<vmem>>, vector<1x12x4xbf16>
    %48 = vector.shape_cast %47 : vector<1x12x4xbf16> to vector<12x4xbf16>
    %cst_25 = arith.constant dense<0.000000e+00> : vector<128x4xf32>
    %49 = tpu.matmul %46, %48, %cst_25 {dimension_numbers = #tpu.dot_dimension_numbers<[1], [0], [0], [1], [0, 0, 1, 1], [], []>} : vector<128x12xbf16>, vector<12x4xbf16>, vector<128x4xf32> -> vector<128x4xf32>
    %50 = arith.addf %44, %49 : vector<128x4xf32>
    %51 = vector.extract_strided_slice %37 {offsets = [2, 0, 0], sizes = [8, 16, 12], strides = [1, 1, 1]} : vector<10x16x12xbf16> to vector<8x16x12xbf16>
    %52 = vector.shape_cast %51 : vector<8x16x12xbf16> to vector<128x12xbf16>
    %c2 = arith.constant 2 : index
    %c0_26 = arith.constant 0 : index
    %c0_27 = arith.constant 0 : index
    %53 = vector.load %arg7[%c2, %c0_26, %c0_27] : memref<3x12x4xbf16, #tpu.memory_space<vmem>>, vector<1x12x4xbf16>
    %54 = vector.shape_cast %53 : vector<1x12x4xbf16> to vector<12x4xbf16>
    %cst_28 = arith.constant dense<0.000000e+00> : vector<128x4xf32>
    %55 = tpu.matmul %52, %54, %cst_28 {dimension_numbers = #tpu.dot_dimension_numbers<[1], [0], [0], [1], [0, 0, 1, 1], [], []>} : vector<128x12xbf16>, vector<12x4xbf16>, vector<128x4xf32> -> vector<128x4xf32>
    %56 = arith.addf %50, %55 : vector<128x4xf32>
    %c0_29 = arith.constant 0 : index
    %c0_30 = arith.constant 0 : index
    %57 = vector.load %arg8[%c0_29, %c0_30] : memref<1x4xf32, #tpu.memory_space<vmem>>, vector<1x4xf32>
    %58 = vector.broadcast %57 : vector<1x4xf32> to vector<128x4xf32>
    %59 = arith.mulf %56, %58 : vector<128x4xf32>
    %c0_31 = arith.constant 0 : index
    %c0_32 = arith.constant 0 : index
    %60 = vector.load %arg9[%c0_31, %c0_32] : memref<1x4xf32, #tpu.memory_space<vmem>>, vector<1x4xf32>
    %61 = vector.broadcast %60 : vector<1x4xf32> to vector<128x4xf32>
    %62 = arith.addf %59, %61 : vector<128x4xf32>
    %cst_33 = arith.constant 0.000000e+00 : f32
    %63 = vector.broadcast %cst_33 : f32 to vector<128x4xf32>
    %64 = arith.maximumf %62, %63 : vector<128x4xf32>
    %65 = arith.truncf %64 : vector<128x4xf32> to vector<128x4xbf16>
    %c0_34 = arith.constant 0 : index
    %c0_35 = arith.constant 0 : index
    %66 = vector.load %arg10[%c0_34, %c0_35] : memref<4x16xbf16, #tpu.memory_space<vmem>>, vector<4x16xbf16>
    %cst_36 = arith.constant dense<0.000000e+00> : vector<128x16xf32>
    %67 = tpu.matmul %65, %66, %cst_36 {dimension_numbers = #tpu.dot_dimension_numbers<[1], [0], [0], [1], [0, 0, 1, 1], [], []>} : vector<128x4xbf16>, vector<4x16xbf16>, vector<128x16xf32> -> vector<128x16xf32>
    %c0_37 = arith.constant 0 : index
    %c0_38 = arith.constant 0 : index
    %68 = vector.load %arg11[%c0_37, %c0_38] : memref<1x16xf32, #tpu.memory_space<vmem>>, vector<1x16xf32>
    %69 = vector.broadcast %68 : vector<1x16xf32> to vector<128x16xf32>
    %70 = arith.mulf %67, %69 : vector<128x16xf32>
    %c0_39 = arith.constant 0 : index
    %c0_40 = arith.constant 0 : index
    %71 = vector.load %arg12[%c0_39, %c0_40] : memref<1x16xf32, #tpu.memory_space<vmem>>, vector<1x16xf32>
    %72 = vector.broadcast %71 : vector<1x16xf32> to vector<128x16xf32>
    %73 = arith.addf %70, %72 : vector<128x16xf32>
    %74 = arith.extf %2 : vector<128x16xbf16> to vector<128x16xf32>
    %75 = arith.addf %73, %74 : vector<128x16xf32>
    %cst_41 = arith.constant 0.000000e+00 : f32
    %76 = vector.broadcast %cst_41 : f32 to vector<128x16xf32>
    %77 = arith.maximumf %75, %76 : vector<128x16xf32>
    %78 = vector.shape_cast %77 : vector<128x16xf32> to vector<8x16x16xf32>
    %c0_42 = arith.constant 0 : index
    %c0_43 = arith.constant 0 : index
    %c0_44 = arith.constant 0 : index
    %c0_45 = arith.constant 0 : index
    %79 = vector.load %arg13[%c0_42, %c0_43, %c0_44, %c0_45] : memref<1x8x16x16xf32, #tpu.memory_space<vmem>>, vector<1x8x16x16xf32>
    %80 = vector.shape_cast %79 : vector<1x8x16x16xf32> to vector<8x16x16xf32>
    %81 = vector.shape_cast %78 : vector<8x16x16xf32> to vector<1x8x16x16xf32>
    tpu.vector_store %arg13[%c0_42, %c0_43, %c0_44, %c0_45], %81 {strides = array<i32>} : memref<1x8x16x16xf32, #tpu.memory_space<vmem>>, vector<1x8x16x16xf32>,
    return
  }
  func.func @transform_0(%arg0: i32, %arg1: i32) -> (i32, i32, i32, i32) {
    %c0_i32 = arith.constant 0 : i32
    %c0_i32_0 = arith.constant 0 : i32
    %c0_i32_1 = arith.constant 0 : i32
    return %arg0, %arg1, %c0_i32, %c0_i32_0 : i32, i32, i32, i32
  }
  func.func @transform_1(%arg0: i32, %arg1: i32) -> (i32, i32, i32, i32, i32) {
    %c0_i32 = arith.constant 0 : i32
    %c0_i32_0 = arith.constant 0 : i32
    %c0_i32_1 = arith.constant 0 : i32
    %c0_i32_2 = arith.constant 0 : i32
    return %arg0, %arg1, %c0_i32, %c0_i32_0, %c0_i32_1 : i32, i32, i32, i32, i32
  }
  func.func @transform_2(%arg0: i32, %arg1: i32) -> (i32, i32) {
    %c0_i32 = arith.constant 0 : i32
    %c0_i32_0 = arith.constant 0 : i32
    %c0_i32_1 = arith.constant 0 : i32
    return %c0_i32, %c0_i32_0 : i32, i32
  }
  func.func @transform_3(%arg0: i32, %arg1: i32) -> (i32, i32) {
    %c0_i32 = arith.constant 0 : i32
    %c0_i32_0 = arith.constant 0 : i32
    %c0_i32_1 = arith.constant 0 : i32
    return %c0_i32, %c0_i32_0 : i32, i32
  }
  func.func @transform_4(%arg0: i32, %arg1: i32) -> (i32, i32) {
    %c0_i32 = arith.constant 0 : i32
    %c0_i32_0 = arith.constant 0 : i32
    %c0_i32_1 = arith.constant 0 : i32
    return %c0_i32, %c0_i32_0 : i32, i32
  }
  func.func @transform_5(%arg0: i32, %arg1: i32) -> (i32, i32, i32) {
    %c0_i32 = arith.constant 0 : i32
    %c0_i32_0 = arith.constant 0 : i32
    %c0_i32_1 = arith.constant 0 : i32
    %c0_i32_2 = arith.constant 0 : i32
    return %c0_i32, %c0_i32_0, %c0_i32_1 : i32, i32, i32
  }
  func.func @transform_6(%arg0: i32, %arg1: i32) -> (i32, i32) {
    %c0_i32 = arith.constant 0 : i32
    %c0_i32_0 = arith.constant 0 : i32
    %c0_i32_1 = arith.constant 0 : i32
    return %c0_i32, %c0_i32_0 : i32, i32
  }
  func.func @transform_7(%arg0: i32, %arg1: i32) -> (i32, i32) {
    %c0_i32 = arith.constant 0 : i32
    %c0_i32_0 = arith.constant 0 : i32
    %c0_i32_1 = arith.constant 0 : i32
    return %c0_i32, %c0_i32_0 : i32, i32
  }
  func.func @transform_8(%arg0: i32, %arg1: i32) -> (i32, i32) {
    %c0_i32 = arith.constant 0 : i32
    %c0_i32_0 = arith.constant 0 : i32
    %c0_i32_1 = arith.constant 0 : i32
    return %c0_i32, %c0_i32_0 : i32, i32
  }
  func.func @transform_9(%arg0: i32, %arg1: i32) -> (i32, i32) {
    %c0_i32 = arith.constant 0 : i32
    %c0_i32_0 = arith.constant 0 : i32
    %c0_i32_1 = arith.constant 0 : i32
    return %c0_i32, %c0_i32_0 : i32, i32
  }
  func.func @transform_10(%arg0: i32, %arg1: i32) -> (i32, i32) {
    %c0_i32 = arith.constant 0 : i32
    %c0_i32_0 = arith.constant 0 : i32
    %c0_i32_1 = arith.constant 0 : i32
    return %c0_i32, %c0_i32_0 : i32, i32
  }
  func.func @transform_11(%arg0: i32, %arg1: i32) -> (i32, i32, i32, i32) {
    %c0_i32 = arith.constant 0 : i32
    %c0_i32_0 = arith.constant 0 : i32
    %c0_i32_1 = arith.constant 0 : i32
    return %arg0, %arg1, %c0_i32, %c0_i32_0 : i32, i32, i32, i32
  }
}

</mosaic_0001>

<bundles_post_ra>
// kernel: tpu_custom_call.1
= control target key start
LH: loop header
LB: loop body
LE: loop exit
PB: predicated region body
PF: predicated region fallthrough
CT: control target
= control target key end

     0   :  { %s3963_s0 = inlined_call_operand.hbm [shape: bf16[2,16,16,16], index: 0, kind: input, shape index: {}]   ;;  %s3964_s1 = inlined_call_operand.hbm [shape: bf16[2,2,2,16,16], index: 1, kind: input, shape index: {}]   ;;  %s3965_s2 = inlined_call_operand.hbm [shape: bf16[16,4], index: 2, kind: input, shape index: {}]   ;;  %s3966_s3 = inlined_call_operand.hbm [shape: f32[1,4], index: 3, kind: input, shape index: {}]   ;;  %s3967_s4 = inlined_call_operand.hbm [shape: f32[1,4], index: 4, kind: input, shape index: {}]   ;;  %s3968_s5 = inlined_call_operand.hbm [shape: bf16[3,12,4], index: 5, kind: input, shape index: {}]   ;;  %s3969_s6 = inlined_call_operand.hbm [shape: f32[1,4], index: 6, kind: input, shape index: {}]   ;;  %s3970_s7 = inlined_call_operand.hbm [shape: f32[1,4], index: 7, kind: input, shape index: {}]   ;;  %s3971_s8 = inlined_call_operand.hbm [shape: bf16[4,16], index: 8, kind: input, shape index: {}]   ;;  %s3972_s9 = inlined_call_operand.hbm [shape: f32[1,16], index: 9, kind: input, shape index: {}]   ;;  %s3973_s10 = inlined_call_operand.hbm [shape: f32[1,16], index: 10, kind: input, shape index: {}]   ;;  %s3974_s11 = inlined_call_operand.hbm [shape: f32[2,16,16,16], index: 11, kind: output, shape index: {}]  }
   0x1   :  { %3991 = sst [smem:[#allocation33_spill]] %s3963_s0 }
   0x2   :  { %3992 = sst [smem:[#allocation34_spill]] %s3964_s1 }
   0x3   :  { %3993 = sst [smem:[#allocation35_spill]] %s3965_s2 }
   0x4   :  { %3994 = sst [smem:[#allocation36_spill]] %s3966_s3 }
   0x5   :  { %3995 = sst [smem:[#allocation37_spill]] %s3967_s4 }
   0x6   :  { %3996 = sst [smem:[#allocation38_spill]] %s3968_s5 }
   0x7   :  { %3997 = sst [smem:[#allocation39_spill]] %s3969_s6 }
   0x8   :  { %3998 = sst [smem:[#allocation40_spill]] %s3970_s7 }
   0x9   :  { %3999 = sst [smem:[#allocation41_spill]] %s3971_s8 }
   0xa   :  { %4000 = sst [smem:[#allocation42_spill]] %s3972_s9 }
   0xb   :  { %4001 = sst [smem:[#allocation43_spill]] %s3973_s10 }
   0xc   :  { %4002 = sst [smem:[#allocation44_spill]] %s3974_s11 }
   0xd   :  { %16 = vsyncpa [#allocation3], 0 }
   0xe   :  { %18 = vsyncpa [#allocation3 + $0x1], 0 }
   0xf   :  { %19 = vsyncpa [#allocation6], 0 }
  0x10   :  { %21 = vsyncpa [#allocation6 + $0x1], 0 }
  0x11   :  { %22 = vsyncpa [#allocation9], 0 }
  0x12   :  { %23 = vsyncpa [#allocation12], 0 }
  0x13   :  { %24 = vsyncpa [#allocation15], 0 }
  0x14   :  { %25 = vsyncpa [#allocation18], 0 }
  0x15   :  { %26 = vsyncpa [#allocation4], 0 }
  0x16   :  { %28 = vsyncpa [#allocation4 + $0x1], 0  ;;  %s3039_s17 = smov 0   ;;  %s3041_s18 = smov 0  }
  0x17   :  { %s3043_s19 = smov 0   ;;  %s3045_s20 = smov 0  }
  0x18   :  { %s3047_s21 = smov 0   ;;  %s3049_s22 = smov 0  }
  0x19   :  { %s3051_s23 = smov 0   ;;  %s3053_s24 = smov 0  }
  0x1a LB: > { %4003 = sst [smem:[#allocation29_spill]] %s2944_s20  ;;  %s3080_s25 = sadd.s32 4294967295, %s2960_s24   ;;  %s2960_s24 = sphi %s3053_s24, %s34_s24   ;;  %s2956_s23 = sphi %s3051_s23, %s4062_s23   ;;  %s2952_s22 = sphi %s3049_s22, %s4061_s22   ;;  %s2948_s21 = sphi %s3047_s21, %s4060_s21   ;;  %s2944_s20 = sphi %s3045_s20, %s4059_s20   ;;  %s2940_s19 = sphi %s3043_s19, %s4058_s19   ;;  %s2936_s18 = sphi %s3041_s18, %s4057_s18   ;;  %s2932_s17 = sphi %s3039_s17, %s4056_s17  }
  0x1b   : > { %4004 = sst [smem:[#allocation30_spill]] %s2948_s21  ;;  %p2041_p0 = scmp.ge.s32.totalorder %s2960_s24, 1 }
  0x1c   : > { %4005 = sst [smem:[#allocation31_spill]] %s3080_s25  ;;  %p3983_p1 = scmp.eq.s32.totalorder %s3080_s25, 0 }
  0x1d   : > { %p324_p2 = scmp.lt.s32.totalorder %s2960_s24, 5  ;;  %s2962_s27 = smov [#allocation7]  }
  0x1e   : > { %s336_s28 = sshll.u32 %s2962_s27, 4  ;;  %s2963_s30 = smov [#allocation8]   ;;  %s3089_s28 = int_to_ptr.vmem [resolvable:$true] %s336_s28 }
  0x1f   : > { %p3085_p3 = pnand %p2041_p0, %p324_p2  ;;  %s350_s12 = sshll.u32 %s2963_s30, 4  ;;  %s3099_s12 = int_to_ptr.vmem [resolvable:$true] %s350_s12 }
  0x20   : > { %s2964_s13 = smov [#allocation11]   ;;  %s4009_s2 = sld [smem:[#allocation35_spill]] }
  0x21   : > { %s4006_s26 = scalar_select %p3085_p3, 1, 0 }
  0x22   : > { %p2367_p4 = pneg %p3085_p3  ;;  %s3101_s14 = sshll.u32 %s2964_s13, 4  ;;  %s372_s14 = int_to_ptr.vmem [resolvable:$true] %s3101_s14 }
  0x23   : > { %4007 = sst [smem:[#allocation32_spill]] %s4006_s26 }
  0x24   : > { %p3095_p5 = pnand %p2367_p4, %p3983_p1 }
  0x26   : > { %s2526_s27 = scalar_lea.hbm %s4009_s2, 128  ;;  %p3111_p7 = pneg %p3095_p5 }
  0x27   : > { %p2527_p6 = scmp.ne.s32.totalorder %s4009_s2, %s2526_s27  ;;  %p2533_p10 = scmp.lt.u32.totalorder %s2526_s27, %s4009_s2 }
  0x29   : > { %p2529_p8 = pnand %p3111_p7, %p2527_p6 }
  0x2b   : > { %p2530_p9 = pneg %p2529_p8 }
  0x2d   : > { %p2535_p11 = pnand %p2533_p10, %p2530_p9 }
  0x2f   : > { %2538 = shalt.err (!%p2535_p11)
}
  0x30   : > { %s2539_s11 = scalar_lea.vmem %s3089_s28, 128  ;;  %p2547_p2 = scmp.lt.s32.totalorder %s3089_s28, %s3089_s28 }
  0x31   : > { %p2540_p12 = scmp.ne.s32.totalorder %s3089_s28, %s2539_s11  ;;  %p2548_p4 = scmp.lt.s32.totalorder %s2539_s11, %s2539_s11 }
  0x33   : > { %p2542_p13 = pnand %p2540_p12, %p3111_p7  ;;  %p2549_p6 = por %p2548_p4, %p2547_p2 }
  0x35   : > { %p2543_p0 = pneg %p2542_p13 }
  0x37   : > { %p2550_p8 = pnand %p2549_p6, %p2543_p0 }
  0x39   : > { %2553 = shalt.err (!%p2550_p8)
}
  0x3a   : > { %s3985_s21 = smov 64   ;;  %s3987_s15 = smov 4  }
  0x3b   : > { %2370 = dma.hbm_to_vmem [thread:$0]  (!%p3095_p5), %s4009_s2, 128, %s3089_s28, [#allocation6], %s3985_s21, %s3985_s21, %s3987_s15  }
  0x3c   : > { %s4011_s3 = sld [smem:[#allocation36_spill]] }
  0x42   : > { %s2554_s11 = scalar_lea.hbm %s4011_s3, 16 }
  0x43   : > { %p2555_p9 = scmp.ne.s32.totalorder %s4011_s3, %s2554_s11  ;;  %p2561_p12 = scmp.lt.u32.totalorder %s2554_s11, %s4011_s3 }
  0x45   : > { %p2557_p10 = pnand %p2555_p9, %p3111_p7 }
  0x47   : > { %p2558_p11 = pneg %p2557_p10 }
  0x49   : > { %p2563_p13 = pnand %p2561_p12, %p2558_p11 }
  0x4b   : > { %2566 = shalt.err (!%p2563_p13)
}
  0x4c   : > { %s2567_s28 = scalar_lea.vmem %s3099_s12, 16  ;;  %s2574_s1 = scalar_lea.vmem %s3099_s12, 32 }
  0x4d   : > { %p2568_p0 = scmp.ne.s32.totalorder %s3099_s12, %s2567_s28  ;;  %p2575_p6 = scmp.lt.s32.totalorder %s3099_s12, %s3099_s12 }
  0x4e   : > { %p2576_p8 = scmp.lt.s32.totalorder %s2574_s1, %s2567_s28 }
  0x4f   : > { %p2570_p2 = pnand %p2568_p0, %p3111_p7 }
  0x50   : > { %p2577_p9 = por %p2576_p8, %p2575_p6 }
  0x51   : > { %p2571_p4 = pneg %p2570_p2 }
  0x53   : > { %p2578_p10 = pnand %p2577_p9, %p2571_p4 }
  0x55   : > { %2581 = shalt.err (!%p2578_p10)
}
  0x56   : > { %2373 = dma.hbm_to_vmem [thread:$0]  (!%p3095_p5), %s4011_s3, 16, %s3099_s12, [#allocation9]  }
  0x57   : > { %s4012_s5 = sld [smem:[#allocation38_spill]] }
  0x5d   : > { %s2582_s27 = scalar_lea.hbm %s4012_s5, 384 }
  0x5e   : > { %p2583_p11 = scmp.ne.s32.totalorder %s4012_s5, %s2582_s27  ;;  %p2589_p0 = scmp.lt.u32.totalorder %s2582_s27, %s4012_s5 }
  0x60   : > { %p2585_p12 = pnand %p2583_p11, %p3111_p7 }
  0x62   : > { %p2586_p13 = pneg %p2585_p12 }
  0x64   : > { %p2591_p2 = pnand %p2589_p0, %p2586_p13 }
  0x66   : > { %2594 = shalt.err (!%p2591_p2)
}
  0x67   : > { %s2595_s1 = scalar_lea.vmem %s372_s14, 384  ;;  %p2603_p9 = scmp.lt.s32.totalorder %s372_s14, %s372_s14 }
  0x68   : > { %p2596_p4 = scmp.ne.s32.totalorder %s372_s14, %s2595_s1  ;;  %p2604_p10 = scmp.lt.s32.totalorder %s2595_s1, %s2595_s1 }
  0x6a   : > { %p2598_p6 = pnand %p2596_p4, %p3111_p7  ;;  %p2605_p1 = por %p2604_p10, %p2603_p9 }
  0x6c   : > { %p2599_p8 = pneg %p2598_p6 }
  0x6e   : > { %p2606_p3 = pnand %p2605_p1, %p2599_p8 }
  0x70   : > { %2609 = shalt.err (!%p2606_p3)
}
  0x71   : > { %2379 = dma.hbm_to_vmem [thread:$0]  (!%p3095_p5), %s4012_s5, 384, %s372_s14, [#allocation12], %s3985_s21, %s3985_s21, %s3987_s15  }
  0x72   : > { %s2967_s25 = smov [#allocation14]   ;;  %s2968_s16 = smov [#allocation17]  }
  0x73   : > { %s396_s26 = sshll.u32 %s2967_s25, 4  ;;  %s418_s27 = sshll.u32 %s2968_s16, 4  ;;  %s397_s26 = int_to_ptr.vmem [resolvable:$true] %s396_s26  ;;  %s419_s27 = int_to_ptr.vmem [resolvable:$true] %s418_s27 }
  0x74   : > { %s4013_s7 = sld [smem:[#allocation40_spill]] }
  0x7a   : > { %s2610_s11 = scalar_lea.hbm %s4013_s7, 16 }
  0x7b   : > { %p2611_p1 = scmp.ne.s32.totalorder %s4013_s7, %s2610_s11  ;;  %p2617_p12 = scmp.lt.u32.totalorder %s2610_s11, %s4013_s7 }
  0x7d   : > { %p2613_p3 = pnand %p2611_p1, %p3111_p7 }
  0x7f   : > { %p2614_p11 = pneg %p2613_p3 }
  0x81   : > { %p2619_p13 = pnand %p2617_p12, %p2614_p11 }
  0x83   : > { %2622 = shalt.err (!%p2619_p13)
}
  0x84   : > { %s2623_s14 = scalar_lea.vmem %s397_s26, 16  ;;  %s2630_s0 = scalar_lea.vmem %s397_s26, 32 }
  0x85   : > { %p2624_p0 = scmp.ne.s32.totalorder %s397_s26, %s2623_s14  ;;  %p2631_p6 = scmp.lt.s32.totalorder %s397_s26, %s397_s26 }
  0x86   : > { %p2632_p8 = scmp.lt.s32.totalorder %s2630_s0, %s2623_s14 }
  0x87   : > { %p2626_p2 = pnand %p2624_p0, %p3111_p7 }
  0x88   : > { %p2633_p9 = por %p2632_p8, %p2631_p6 }
  0x89   : > { %p2627_p4 = pneg %p2626_p2 }
  0x8b   : > { %p2634_p10 = pnand %p2633_p9, %p2627_p4 }
  0x8d   : > { %2637 = shalt.err (!%p2634_p10)
}
  0x8e   : > { %2385 = dma.hbm_to_vmem [thread:$0]  (!%p3095_p5), %s4013_s7, 16, %s397_s26, [#allocation15]  }
  0x8f   : > { %s4014_s9 = sld [smem:[#allocation42_spill]] }
  0x95   : > { %s2638_s13 = scalar_lea.hbm %s4014_s9, 16 }
  0x96   : > { %p2639_p1 = scmp.ne.s32.totalorder %s4014_s9, %s2638_s13  ;;  %p2645_p12 = scmp.lt.u32.totalorder %s2638_s13, %s4014_s9 }
  0x98   : > { %p2641_p3 = pnand %p2639_p1, %p3111_p7 }
  0x9a   : > { %p2642_p11 = pneg %p2641_p3 }
  0x9c   : > { %p2647_p13 = pnand %p2645_p12, %p2642_p11 }
  0x9e   : > { %2650 = shalt.err (!%p2647_p13)
}
  0x9f   : > { %s2651_s14 = scalar_lea.vmem %s419_s27, 16  ;;  %s2658_s26 = scalar_lea.vmem %s419_s27, 32 }
  0xa0   : > { %p2652_p0 = scmp.ne.s32.totalorder %s419_s27, %s2651_s14  ;;  %p2659_p6 = scmp.lt.s32.totalorder %s419_s27, %s419_s27 }
  0xa1   : > { %p2660_p8 = scmp.lt.s32.totalorder %s2658_s26, %s2651_s14 }
  0xa2   : > { %p2654_p2 = pnand %p2652_p0, %p3111_p7 }
  0xa3   : > { %p2661_p9 = por %p2660_p8, %p2659_p6 }
  0xa4   : > { %p2655_p4 = pneg %p2654_p2 }
  0xa6   : > { %p2662_p10 = pnand %p2661_p9, %p2655_p4 }
  0xa8   : > { %2665 = shalt.err (!%p2662_p10)
}
  0xa9   : > { %2391 = dma.hbm_to_vmem [thread:$0]  (!%p3095_p5), %s4014_s9, 16, %s419_s27, [#allocation18]  }
  0xaa   : > { %s2969_s16 = smov [#allocation10]   ;;  %s2970_s30 = smov [#allocation13]  }
  0xab   : > { %s361_s2 = sshll.u32 %s2969_s16, 4  ;;  %s385_s13 = sshll.u32 %s2970_s30, 4  ;;  %s362_s2 = int_to_ptr.vmem [resolvable:$true] %s361_s2  ;;  %s386_s13 = int_to_ptr.vmem [resolvable:$true] %s385_s13 }
  0xac   : > { %s4015_s4 = sld [smem:[#allocation37_spill]] }
  0xb2   : > { %s2666_s1 = scalar_lea.hbm %s4015_s4, 16 }
  0xb3   : > { %p2667_p1 = scmp.ne.s32.totalorder %s4015_s4, %s2666_s1  ;;  %p2673_p12 = scmp.lt.u32.totalorder %s2666_s1, %s4015_s4 }
  0xb5   : > { %p2669_p3 = pnand %p2667_p1, %p3111_p7 }
  0xb7   : > { %p2670_p11 = pneg %p2669_p3 }
  0xb9   : > { %p2675_p13 = pnand %p2673_p12, %p2670_p11 }
  0xbb   : > { %2678 = shalt.err (!%p2675_p13)
}
  0xbc   : > { %s2679_s27 = scalar_lea.vmem %s362_s2, 16  ;;  %s2686_s25 = scalar_lea.vmem %s362_s2, 32 }
  0xbd   : > { %p2680_p0 = scmp.ne.s32.totalorder %s362_s2, %s2679_s27  ;;  %p2687_p6 = scmp.lt.s32.totalorder %s362_s2, %s362_s2 }
  0xbe   : > { %p2688_p8 = scmp.lt.s32.totalorder %s2686_s25, %s2679_s27 }
  0xbf   : > { %p2682_p2 = pnand %p2680_p0, %p3111_p7 }
  0xc0   : > { %p2689_p9 = por %p2688_p8, %p2687_p6 }
  0xc1   : > { %p2683_p4 = pneg %p2682_p2 }
  0xc3   : > { %p2690_p10 = pnand %p2689_p9, %p2683_p4 }
  0xc5   : > { %2693 = shalt.err (!%p2690_p10)
}
  0xc6   : > { %2376 = dma.hbm_to_vmem [thread:$0]  (!%p3095_p5), %s4015_s4, 16, %s362_s2, [#allocation9]  }
  0xc7   : > { %s4016_s6 = sld [smem:[#allocation39_spill]] }
  0xcd   : > { %s2694_s1 = scalar_lea.hbm %s4016_s6, 16 }
  0xce   : > { %p2695_p1 = scmp.ne.s32.totalorder %s4016_s6, %s2694_s1  ;;  %p2701_p12 = scmp.lt.u32.totalorder %s2694_s1, %s4016_s6 }
  0xd0   : > { %p2697_p3 = pnand %p2695_p1, %p3111_p7 }
  0xd2   : > { %p2698_p11 = pneg %p2697_p3 }
  0xd4   : > { %p2703_p13 = pnand %p2701_p12, %p2698_p11 }
  0xd6   : > { %2706 = shalt.err (!%p2703_p13)
}
  0xd7   : > { %s2707_s27 = scalar_lea.vmem %s386_s13, 16  ;;  %s2714_s2 = scalar_lea.vmem %s386_s13, 32 }
  0xd8   : > { %p2708_p0 = scmp.ne.s32.totalorder %s386_s13, %s2707_s27  ;;  %p2715_p6 = scmp.lt.s32.totalorder %s386_s13, %s386_s13 }
  0xd9   : > { %p2716_p8 = scmp.lt.s32.totalorder %s2714_s2, %s2707_s27 }
  0xda   : > { %p2710_p2 = pnand %p2708_p0, %p3111_p7 }
  0xdb   : > { %p2717_p9 = por %p2716_p8, %p2715_p6 }
  0xdc   : > { %p2711_p4 = pneg %p2710_p2 }
  0xde   : > { %p2718_p10 = pnand %p2717_p9, %p2711_p4 }
  0xe0   : > { %2721 = shalt.err (!%p2718_p10)
}
  0xe1   : > { %2382 = dma.hbm_to_vmem [thread:$0]  (!%p3095_p5), %s4016_s6, 16, %s386_s13, [#allocation12]  }
  0xe2   : > { %s2971_s30 = smov [#allocation16]   ;;  %s2972_s28 = smov [#allocation19]  }
  0xe3   : > { %s407_s11 = sshll.u32 %s2971_s30, 4  ;;  %s429_s1 = sshll.u32 %s2972_s28, 4  ;;  %s408_s11 = int_to_ptr.vmem [resolvable:$true] %s407_s11  ;;  %s430_s1 = int_to_ptr.vmem [resolvable:$true] %s429_s1 }
  0xe4   : > { %s4017_s8 = sld [smem:[#allocation41_spill]] }
  0xea   : > { %s2722_s26 = scalar_lea.hbm %s4017_s8, 32 }
  0xeb   : > { %p2723_p1 = scmp.ne.s32.totalorder %s4017_s8, %s2722_s26  ;;  %p2729_p12 = scmp.lt.u32.totalorder %s2722_s26, %s4017_s8 }
  0xed   : > { %p2725_p3 = pnand %p2723_p1, %p3111_p7 }
  0xef   : > { %p2726_p11 = pneg %p2725_p3 }
  0xf1   : > { %p2731_p13 = pnand %p2729_p12, %p2726_p11 }
  0xf3   : > { %2734 = shalt.err (!%p2731_p13)
}
  0xf4   : > { %s2735_s13 = scalar_lea.vmem %s408_s11, 32  ;;  %p2743_p6 = scmp.lt.s32.totalorder %s408_s11, %s408_s11 }
  0xf5   : > { %p2736_p0 = scmp.ne.s32.totalorder %s408_s11, %s2735_s13  ;;  %p2744_p8 = scmp.lt.s32.totalorder %s2735_s13, %s2735_s13 }
  0xf7   : > { %p2738_p2 = pnand %p2736_p0, %p3111_p7  ;;  %p2745_p9 = por %p2744_p8, %p2743_p6 }
  0xf9   : > { %p2739_p4 = pneg %p2738_p2 }
  0xfb   : > { %p2746_p10 = pnand %p2745_p9, %p2739_p4 }
  0xfd   : > { %2749 = shalt.err (!%p2746_p10)
}
  0xfe   : > { %2388 = dma.hbm_to_vmem [thread:$0]  (!%p3095_p5), %s4017_s8, 32, %s408_s11, [#allocation15]  }
  0xff   : > { %s4018_s10 = sld [smem:[#allocation43_spill]] }
 0x105   : > { %s2750_s14 = scalar_lea.hbm %s4018_s10, 16 }
 0x106   : > { %p2751_p1 = scmp.ne.s32.totalorder %s4018_s10, %s2750_s14  ;;  %p2757_p12 = scmp.lt.u32.totalorder %s2750_s14, %s4018_s10 }
 0x108   : > { %p2753_p3 = pnand %p2751_p1, %p3111_p7 }
 0x10a   : > { %p2754_p11 = pneg %p2753_p3 }
 0x10c   : > { %p2759_p13 = pnand %p2757_p12, %p2754_p11 }
 0x10e   : > { %2762 = shalt.err (!%p2759_p13)
}
 0x10f   : > { %s2763_s25 = scalar_lea.vmem %s430_s1, 16  ;;  %s2770_s11 = scalar_lea.vmem %s430_s1, 32 }
 0x110   : > { %p2764_p0 = scmp.ne.s32.totalorder %s430_s1, %s2763_s25  ;;  %p2771_p6 = scmp.lt.s32.totalorder %s430_s1, %s430_s1 }
 0x111   : > { %p2772_p8 = scmp.lt.s32.totalorder %s2770_s11, %s2763_s25 }
 0x112   : > { %p2766_p2 = pnand %p2764_p0, %p3111_p7 }
 0x113   : > { %p2773_p9 = por %p2772_p8, %p2771_p6 }
 0x114   : > { %p2767_p4 = pneg %p2766_p2 }
 0x116   : > { %p2774_p10 = pnand %p2773_p9, %p2767_p4 }
 0x118   : > { %2777 = shalt.err (!%p2774_p10)
}
 0x119   : > { %s4019_s20 = sld [smem:[#allocation31_spill]]  ;;  %s2040_s30 = sadd.s32 4294967294, %s2960_s24  }
 0x11a   : > { %2394 = dma.hbm_to_vmem [thread:$0]  (!%p3095_p5), %s4018_s10, 16, %s430_s1, [#allocation18]  }
 0x11b   : > { %s43_s28 = sadd.s32 1, %s2952_s22  ;;  %s46_s29 = sadd.s32 1, %s2956_s23 }
 0x11c   : > { %p44_p7 = scmp.ge.s32.totalorder %s43_s28, 2  ;;  %s55_s12 = sadd.s32 1, %s2940_s19 }
 0x11d   : > { %p62_p1 = scmp.ne.s32.totalorder %s2940_s19, %s2936_s18  ;;  %p63_p3 = scmp.eq.s32.totalorder %s2960_s24, 0 }
 0x11e   : > { %s4064_s28 = smov (%p44_p7, %s43_s28), 0  ;;  %s4066_s29 = smov (!%p44_p7, %s46_s29), %s2956_s23 }
 0x11f   : > { %s51_s14 = ssub.s32 %s2952_s22, %s4064_s28  ;;  %p3301_p11 = por %p63_p3, %p62_p1 }
 0x120   : > { %p48_p5 = scmp.ge.s32.totalorder %s4066_s29, 2  ;;  %p68_p12 = scmp.ne.s32.totalorder %s2936_s18, %s2932_s17 }
 0x121   : > { %p311_p13 = scmp.eq.s32.totalorder %s4019_s20, 3  ;;  %p317_p0 = scmp.eq.s32.totalorder %s2040_s30, 3 }
 0x122   : > { %s4068_s29 = smov (%p48_p5, %s4066_s29), 0  ;;  %p4021_p2 = scmp.eq.s32.totalorder %s4019_s20, 0 }
 0x123   : > { %p3316_p6 = por %p311_p13, %p62_p1  ;;  %s50_s27 = ssub.s32 %s2956_s23, %s4068_s29 }
 0x124   : > { %p3312_p4 = por %p4021_p2, %p68_p12  ;;  %p3322_p8 = por %p317_p0, %p68_p12 }
 0x125   : > { %s4023_s0 = scalar_select %p3316_p6, 1, 0 }
 0x126   : > { %s4024_s2 = scalar_select %p3322_p8, 1, 0 }
 0x127   : > { %s52_s25 = sor.u32 %s51_s14, %s50_s27  ;;  %p2415_p9 = scmp.lt.s32.totalorder %s2960_s24, 4 }
 0x128   : > { %p53_p10 = scmp.eq.s32.totalorder %s52_s25, 0  ;;  %s3328_s11 = sand.u32 1, %s2940_s19  }
 0x129   : > { %s2052_s13 = sshll.u32 %s3328_s11, 6  ;;  %s2143_s20 = sshll.u32 %s2952_s22, 4 }
 0x12a   : > { %s3332_s16 = scalar_select %p53_p10, %s2940_s19, %s55_s12  }
 0x12b   : > { %s2055_s30 = sshll.u32 %s2956_s23, 5  ;;  %s444_s21 = scalar_lea.vmem [#allocation2], %s2052_s13 }
 0x12c   : > { %s454_s15 = sshll.u32 %s444_s21, 4  ;;  %s451_s3 = sadd.s32 %s2143_s20, %s2055_s30  ;;  %s3336_s15 = int_to_ptr.vmem [resolvable:$true] %s454_s15 }
 0x12d   : > { %s2056_s4 = sshll.u32 %s451_s3, 6  ;;  %p3340_p7 = pnand %p2415_p9, %p3301_p11 }
 0x12e   : > { %s4026_s5 = sld [smem:[#allocation33_spill]]  ;;  %s441_s13 = scalar_lea.sflag [#allocation3], %s3328_s11 }
 0x12f   : > { %p2780_p3 = pneg %p3340_p7 }
 0x134   : > { %s3347_s12 = scalar_lea.hbm %s4026_s5, %s2056_s4  ;;  %s2783_s30 = scalar_lea.hbm %s4026_s5, 4096 }
 0x135   : > { %s2778_s20 = scalar_lea.hbm %s3347_s12, 1024  ;;  %p2784_p12 = scmp.lt.u32.totalorder %s3347_s12, %s4026_s5 }
 0x136   : > { %p2779_p1 = scmp.ne.s32.totalorder %s3347_s12, %s2778_s20  ;;  %p2785_p13 = scmp.lt.u32.totalorder %s2783_s30, %s2778_s20 }
 0x137   : > { %p2787_p2 = scmp.lt.u32.totalorder %s2778_s20, %s3347_s12 }
 0x138   : > { %p2781_p11 = pnand %p2780_p3, %p2779_p1  ;;  %p2786_p0 = por %p2785_p13, %p2784_p12 }
 0x13a   : > { %p2782_p5 = pneg %p2781_p11  ;;  %p2788_p9 = por %p2787_p2, %p2786_p0 }
 0x13c   : > { %p2789_p10 = pnand %p2788_p9, %p2782_p5 }
 0x13e   : > { %2792 = shalt.err (!%p2789_p10)
}
 0x13f   : > { %s2793_s25 = scalar_lea.vmem %s3336_s15, 1024  ;;  %s2973_s3 = smov [#allocation2]  }
 0x140   : > { %p2794_p1 = scmp.ne.s32.totalorder %s3336_s15, %s2793_s25  ;;  %s2798_s26 = sshll.u32 %s2973_s3, 4  ;;  %s2799_s26 = int_to_ptr.vmem [resolvable:$false] %s2798_s26 }
 0x141   : > { %s2800_s4 = scalar_lea.vmem %s2799_s26, 2048  ;;  %p2801_p6 = scmp.lt.s32.totalorder %s3336_s15, %s2799_s26 }
 0x142   : > { %p2796_p11 = pnand %p2794_p1, %p2780_p3  ;;  %p2802_p12 = scmp.lt.s32.totalorder %s2800_s4, %s2793_s25 }
 0x144   : > { %p2797_p8 = pneg %p2796_p11  ;;  %p2803_p13 = por %p2802_p12, %p2801_p6 }
 0x146   : > { %p2804_p0 = pnand %p2803_p13, %p2797_p8 }
 0x148   : > { %2807 = shalt.err (!%p2804_p0)
}
 0x149   : > { %s4027_s20 = smov 4   ;;  %s4028_s30 = smov 64  }
 0x14a   : > { %2398 = dma.hbm_to_vmem [thread:$0]  (!%p3340_p7), %s3347_s12, 1024, %s3336_s15, %s441_s13, %s4028_s30, %s4028_s30, %s4027_s20  }
 0x14b   : > { %s2057_s27 = sshll.u32 %s3328_s11, 4  ;;  %s2058_s25 = sshll.u32 %s2952_s22, 2 }
 0x14c   : > { %s2059_s3 = sshll.u32 %s2956_s23, 3  ;;  %s468_s4 = scalar_lea.vmem [#allocation5], %s2057_s27 }
 0x14d   : > { %s474_s26 = sadd.s32 %s2059_s3, %s2058_s25  ;;  %s477_s21 = sshll.u32 %s468_s4, 4  ;;  %s3384_s21 = int_to_ptr.vmem [resolvable:$true] %s477_s21 }
 0x14e   : > { %s2060_s5 = sshll.u32 %s474_s26, 6  ;;  %s4029_s8 = sld [smem:[#allocation34_spill]] }
 0x14f   : > { %s4030_s10 = sand.u32 1, %s2960_s24  }
 0x150   : > { %s3393_s15 = scalar_lea.sflag [#allocation6], %s4030_s10 }
 0x154   : > { %s3389_s9 = scalar_lea.hbm %s4029_s8, %s2060_s5  ;;  %s2813_s27 = scalar_lea.hbm %s4029_s8, 1024 }
 0x155   : > { %s2808_s11 = scalar_lea.hbm %s3389_s9, 256  ;;  %p2814_p2 = scmp.lt.u32.totalorder %s3389_s9, %s4029_s8 }
 0x156   : > { %p2809_p6 = scmp.ne.s32.totalorder %s3389_s9, %s2808_s11  ;;  %p2815_p9 = scmp.lt.u32.totalorder %s2813_s27, %s2808_s11 }
 0x157   : > { %p2817_p1 = scmp.lt.u32.totalorder %s2808_s11, %s3389_s9 }
 0x158   : > { %p2811_p8 = pnand %p2809_p6, %p2780_p3  ;;  %p2816_p10 = por %p2815_p9, %p2814_p2 }
 0x15a   : > { %p2812_p5 = pneg %p2811_p8  ;;  %p2818_p11 = por %p2817_p1, %p2816_p10 }
 0x15c   : > { %p2819_p12 = pnand %p2818_p11, %p2812_p5 }
 0x15e   : > { %2822 = shalt.err (!%p2819_p12)
}
 0x15f   : > { %s2823_s7 = scalar_lea.vmem %s3384_s21, 256  ;;  %s2974_s10 = smov [#allocation5]  }
 0x160   : > { %p2824_p13 = scmp.ne.s32.totalorder %s3384_s21, %s2823_s7  ;;  %s2828_s25 = sshll.u32 %s2974_s10, 4  ;;  %s2829_s25 = int_to_ptr.vmem [resolvable:$false] %s2828_s25 }
 0x161   : > { %s2830_s3 = scalar_lea.vmem %s2829_s25, 512  ;;  %p2831_p8 = scmp.lt.s32.totalorder %s3384_s21, %s2829_s25 }
 0x162   : > { %p2826_p0 = pnand %p2824_p13, %p2780_p3  ;;  %p2832_p2 = scmp.lt.s32.totalorder %s2830_s3, %s2823_s7 }
 0x164   : > { %p2827_p6 = pneg %p2826_p0  ;;  %p2833_p9 = por %p2832_p2, %p2831_p8 }
 0x166   : > { %p2834_p10 = pnand %p2833_p9, %p2827_p6 }
 0x168   : > { %2837 = shalt.err (!%p2834_p10)
}
 0x169   : > { %2401 = dma.hbm_to_vmem [thread:$0]  (!%p3340_p7), %s3389_s9, 256, %s3384_s21, %s3393_s15, %s4028_s30, %s4028_s30, %s4027_s20  }
 0x16a   : > { %s4031_s26 = sld [smem:[#allocation32_spill]] }
 0x170   : > { %p4032_p3 = scmp.ne.s32.totalorder %s4031_s26, 0 }
 0x171   : > { %s3425_s4 = sand.u32 (!%p4032_p3), 1, %s2936_s18  }
 0x172   : > { %489 = sbr.rel (%p4032_p3) target bundleno = 1311 (0x51f), region = 64  ;;  %s2062_s11 = sshll.u32 (!%p4032_p3), %s3425_s4, 6 }
 0x173   : > { %s492_s12 = scalar_lea.sflag (!%p4032_p3), [#allocation3], %s3425_s4  ;;  %s3429_s13 = scalar_lea.vmem (!%p4032_p3), [#allocation2], %s2062_s11 }
 0x179   : > { %2899 = dma.done.wait (%p3312_p4), %s492_s12, 1024  }
 0x17a   : > { %2901 = vsyncadd (%p3312_p4), %s492_s12, 4294966272  ;;  %s4033_s14 = sld [smem:[#allocation31_spill]]  ;;  %s2063_s21 = sshll.u32 %s3425_s4, 4 }
 0x17b   : > { %s3437_s30 = scalar_lea.vmem [#allocation5], %s2063_s21 }
 0x180   : > { %s500_s9 = sand.u32 1, %s4033_s14  }
 0x181   : > { %s501_s20 = scalar_lea.sflag [#allocation6], %s500_s9 }
 0x182   : > { %2903 = dma.done.wait (%p3312_p4), %s501_s20, 256  }
 0x183   : > { %2905 = vsyncadd (%p3312_p4), %s501_s20, 4294967040  ;;  %p4034_p7 = scmp.eq.s32.totalorder %s4033_s14, 0 }
 0x185   : > { %2907 = dma.done.wait (%p4034_p7), [#allocation6], 128   ;;  %p4035_p5 = pmov %p4034_p7 }
 0x187   : > { %2909 = vsyncadd (%p4035_p5), [#allocation6], 4294967168  ;;  %p4036_p1 = pmov %p4035_p5 }
 0x189   : > { %2911 = dma.done.wait (%p4036_p1), [#allocation9], 32   ;;  %p4037_p11 = pmov %p4036_p1 }
 0x18a   : > { %p4038_p12 = pmov %p4036_p1 }
 0x18b   : > { %2913 = vsyncadd (%p4037_p11), [#allocation9], 4294967264 }
 0x18c   : > { %2915 = dma.done.wait (%p4038_p12), [#allocation12], 400   ;;  %p4039_p13 = pmov %p4036_p1 }
 0x18d   : > { %p4040_p4 = pmov %p4036_p1 }
 0x18e   : > { %2917 = vsyncadd (%p4039_p13), [#allocation12], 4294966896 }
 0x18f   : > { %2919 = dma.done.wait (%p4040_p4), [#allocation15], 48   ;;  %p4041_p0 = pmov %p4036_p1 }
 0x191   : > { %2921 = vsyncadd (%p4041_p0), [#allocation15], 4294967248  ;;  %p4042_p6 = pmov %p4041_p0 }
 0x192   : > { %p4043_p8 = pmov %p4041_p0 }
 0x193   : > { %2923 = dma.done.wait (%p4042_p6), [#allocation18], 32  }
 0x194   : > { %2925 = vsyncadd (%p4043_p8), [#allocation18], 4294967264  ;;  %v2504_v0 = vld [vmem:[#allocation7] sm:$0xff]   ;;  %vm665_vm0 = vcmask 130048   ;;  %v3467_v2 = vld [vmem:[%s3429_s13 + $0x8] sm:$0xff]   ;;  %s4044_s1 = sld [smem:[#allocation29_spill]] }
 0x195   : > { %v3464_v1 = vld [vmem:[%s3429_s13] sm:$0xff]   ;;  %v3470_v3 = vld [vmem:[%s3429_s13 + $0x10] sm:$0xff]   ;;  %2192 = vmatprep.subr.bf16.mxu0 %v2504_v0  ;;  %v3479_v4 = vld [vmem:[%s3429_s13 + $0x18] sm:$0xff]   ;;  %vm1181_vm1 = vcmask 1045504   ;;  %vm1029_vm2 = vcmask 1047552   ;;  %s2975_s6 = smov 4  }
 0x196   : > { %2193 = vmatpush3.bf16.msra.mxu0 %v2504_v0  ;;  %2194 = vmatprep.mubr.msk.bf16.mxu0 %vm665_vm0, %v3464_v1  ;;  %v3482_v5 = vld [vmem:[%s3429_s13 + $0x20] sm:$0xff]   ;;  %v3489_v6 = vld [vmem:[%s3429_s13 + $0x28] sm:$0xff]   ;;  %v3492_v7 = vld [vmem:[%s3429_s13 + $0x30] sm:$0xff]   ;;  %vm1030_vm3 = vsmask.f32 7424  ;;  %s2976_s10 = smov 8  }
 0x197   : > { %v3499_v8 = vld [vmem:[%s3429_s13 + $0x38] sm:$0xff]   ;;  %v2513_v9 = vld [vmem:[%s3437_s30] sm:$0xff]   ;;  %v3507_v11 = vld [vmem:[#allocation8] ss:$0 sm:$0xff]  ;;  %vm986_vm7 = vcmask 1040384   ;;  %vm1102_vm10 = vcmask 31744  }
 0x198   : > { %v2514_v10 = vld [vmem:[%s3437_s30 + $0x8] sm:$0xff]   ;;  %vm3583_vm4 = vmand %vm1029_vm2, %vm1030_vm3  ;;  %vm987_vm8 = vsmask.f32 256  ;;  %vm1133_vm11 = vcmask 64512   ;;  %vm1164_vm12 = vcmask 97280   ;;  %vm1610_vm13 = vcmask 1041408  }
 0x199   : > { %2195 = vmatmul.mubr.msk.bf16.vlgmr.msra.gmra.mrb[0].mxu0 %vm665_vm0, %v3467_v2  ;;  %v3509_v13 = vld [vmem:[#allocation10] ss:$0 sm:$0xff]  ;;  %v2515_v44 = vld [vmem:[#allocation11 + $0x8] sm:$0x3f]   ;;  %v3554_v63 = vld [vmem:[#allocation11] sm:$0x3f]  }
 0x19a   : > { %2198 = vmatprep.mubr.msk.bf16.mxu0 %vm665_vm0, %v3470_v3  ;;  %s889_s15 = sadd.s32 1, %s4044_s1  ;;  %p883_p2 = scmp.gt.s32.totalorder %s4044_s1, 0  ;;  %2321 = vmatprep.subr.msk.bf16.mxu1 %vm1181_vm1, %v2515_v44  ;;  %v1183_v55 = vsel %vm1181_vm1, %v2515_v44, 0  ;;  %vm3653_vm9 = vmand %vm986_vm7, %vm987_vm8 }
 0x19b   : > { %2320 = vmatprep.subr.msk.bf16.mxu0 %vm1181_vm1, %v2515_v44  ;;  %p3545_p9 = scmp.lt.s32.totalorder %s889_s15, 2  ;;  %2287 = vmatpush3.bf16.msra.mxu1 %v1183_v55  ;;  %s2073_s25 = sshll.u32 %s3425_s4, 7 }
 0x19c   : > { %2215 = vmatpush3.bf16.msra.mxu0 %v1183_v55  ;;  %s3567_s5 = scalar_select %p883_p2, 1, 0  ;;  %2322 = vmatprep.subr.msk.bf16.mxu1 %vm1181_vm1, %v3554_v63 }
 0x19d   : > { %s891_s7 = scalar_select %p3545_p9, 1, 0 }
 0x19e   : > { %s3830_s3 = scalar_lea.vmem [#allocation20], %s2073_s25  ;;  %s4052_s26 = sld [smem:[#allocation30_spill]] }
 0x19f   : > { %v3588_v44 = vstv %s891_s7  ;;  %s2144_s11 = sshll.u32 %s4044_s1, 4  ;;  %s1838_s14 = sshll.u32 %s3830_s3, 4  ;;  %s3897_s14 = int_to_ptr.vmem [resolvable:$true] %s1838_s14 }
 0x1a0   : > { %vm893_vm6 = vcmp.eq.s32.totalorder %v3588_v44, 1  ;;  %s4053_s30 = sld [smem:[#allocation44_spill]]  ;;  %s1822_s15 = scalar_lea.sflag [#allocation4], %s3425_s4 }
 0x1a1   : > { %2199 = vmatmul.mubr.msk.bf16.gmra.mrb[4].mxu0 %vm665_vm0, %v3479_v4  ;;  %s2838_s27 = scalar_lea.vmem %s3897_s14, 2048  ;;  %p4054_p3 = scmp.ne.s32.totalorder %s4023_s0, 0 }
 0x1a2   : > { %2202 = vmatprep.mubr.msk.bf16.mxu0 %vm665_vm0, %v3482_v5  ;;  %p2839_p10 = scmp.ne.s32.totalorder %s3897_s14, %s2838_s27 }
 0x1a4   : > { %s2139_s12 = sshll.u32 %s4052_s26, 5  ;;  %p2840_p7 = pnand %p2839_p10, %p4054_p3 }
 0x1a5   : > { %s1835_s13 = sadd.s32 %s2144_s11, %s2139_s12 }
 0x1a6   : > { %s2140_s9 = sshll.u32 %s1835_s13, 7  ;;  %p2841_p5 = pneg %p2840_p7 }
 0x1a7   : > { %s3904_s1 = scalar_lea.hbm %s4053_s30, %s2140_s9 }
 0x1a9   : > { %2203 = vmatmul.mubr.msk.bf16.gmra.mrb[8].mxu0 %vm665_vm0, %v3489_v6 }
 0x1aa   : > { %2206 = vmatprep.mubr.msk.bf16.mxu0 %vm665_vm0, %v3492_v7 }
 0x1b1   : > { %2207 = vmatmul.mubr.msk.bf16.gmra.mrb[12].mxu0 %vm665_vm0, %v3499_v8 }
 0x1b2   : > { %2210 = vmatprep.mubr.msk.bf16.mxu0 %vm665_vm0, %v2513_v9 }
 0x1b9   : > { %2211 = vmatmul.mubr.msk.bf16.gmra.mrb[16].mxu0 %vm665_vm0, %v2514_v10 }
 0x26c   : > { %v2196_v12 = vpop.f32.mrb[0].mxu0 }
 0x26d   : > { %v818_v14 = vmul.f32 %v2196_v12, %v3507_v11  ;;  %v730_v15 = vpop.f32.mrb[1].mxu0 }
 0x26e   : > { %v816_v16 = vmul.f32 %v3507_v11, %v730_v15  ;;  %v2197_v17 = vpop.f32.mrb[2].mxu0 }
 0x26f   : > { %v845_v18 = vadd.f32 %v3509_v13, %v818_v14  ;;  %v819_v19 = vmul.f32 %v2197_v17, %v3507_v11  ;;  %v733_v20 = vpop.f32.mrb[3].mxu0 }
 0x270   : > { %v843_v21 = vadd.f32 %v3509_v13, %v816_v16  ;;  %v817_v22 = vmul.f32 %v3507_v11, %v733_v20 }
 0x271   : > { %v846_v23 = vadd.f32 %v3509_v13, %v819_v19  ;;  %v865_v25 = vmax.f32 %v845_v18, 0.0 }
 0x272   : > { %v844_v24 = vadd.f32 %v3509_v13, %v817_v22  ;;  %v863_v27 = vmax.f32 %v843_v21, 0.0 }
 0x273   : > { %v866_v26 = vmax.f32 %v846_v23, 0.0 }
 0x274   : > { %v864_v28 = vmax.f32 %v844_v24, 0.0  ;;  %v2200_v29 = vpop.f32.mrb[4].mxu0 }
 0x275   : > { %v822_v30 = vmul.f32 %v2200_v29, %v3507_v11  ;;  %v746_v31 = vpop.f32.mrb[5].mxu0  ;;  %v3520_v32 = vpack.c.bf16 %v866_v26, %v865_v25 }
 0x276   : > { %v820_v33 = vmul.f32 %v3507_v11, %v746_v31  ;;  %v2201_v34 = vpop.f32.mrb[6].mxu0  ;;  %v3523_v35 = vpack.c.bf16 %v864_v28, %v863_v27 }
 0x277   : > { %v849_v36 = vadd.f32 %v3509_v13, %v822_v30  ;;  %v823_v37 = vmul.f32 %v2201_v34, %v3507_v11  ;;  %v749_v38 = vpop.f32.mrb[7].mxu0  ;;  %v921_v39 = vshrl.u32 %v3520_v32, 16  ;;  %v924_v54 = vshll.u32 %v3520_v32, 16 }
 0x278   : > { %v847_v40 = vadd.f32 %v3509_v13, %v820_v33  ;;  %v821_v41 = vmul.f32 %v3507_v11, %v749_v38  ;;  %v914_v42 = vshrl.u32 %v3523_v35, 16  ;;  %v917_v50 = vshll.u32 %v3523_v35, 16 }
 0x279   : > { %v850_v43 = vadd.f32 %v3509_v13, %v823_v37  ;;  %v923_v47 = vrot.slane %v921_v39, 7  ;;  %v869_v48 = vmax.f32 %v849_v36, 0.0 }
 0x27a   : > { %v848_v45 = vadd.f32 %v3509_v13, %v821_v41  ;;  %v916_v46 = vrot.slane %v914_v42, 7  ;;  %v867_v51 = vmax.f32 %v847_v40, 0.0 }
 0x27b   : > { %v870_v49 = vmax.f32 %v850_v43, 0.0  ;;  %v3558_v0 = vor.u32 %v924_v54, %v923_v47  ;;  %v885_v43 = vstv %s3567_s5 }
 0x27c   : > { %v868_v52 = vmax.f32 %v848_v45, 0.0  ;;  %v2204_v53 = vpop.f32.mrb[8].mxu0  ;;  %v3551_v59 = vor.u32 %v917_v50, %v916_v46  ;;  %vm3609_vm5 = vcmp.eq.s32.totalorder %v885_v43, 1 }
 0x27d   : > { %v826_v56 = vmul.f32 %v2204_v53, %v3507_v11  ;;  %v762_v57 = vpop.f32.mrb[9].mxu0  ;;  %v900_v58 = vpack.c.bf16 %v870_v49, %v869_v48 }
 0x27e   : > { %v824_v60 = vmul.f32 %v3507_v11, %v762_v57  ;;  %v2205_v61 = vpop.f32.mrb[10].mxu0  ;;  %v899_v62 = vpack.c.bf16 %v868_v52, %v867_v51 }
 0x27f   : > { %v853_v9 = vadd.f32 %v3509_v13, %v826_v56  ;;  %v827_v10 = vmul.f32 %v2205_v61, %v3507_v11  ;;  %v765_v12 = vpop.f32.mrb[11].mxu0  ;;  %v935_v14 = vshrl.u32 %v900_v58, 16  ;;  %v938_v15 = vshll.u32 %v900_v58, 16 }
 0x280   : > { %v851_v16 = vadd.f32 %v3509_v13, %v824_v60  ;;  %v825_v17 = vmul.f32 %v3507_v11, %v765_v12  ;;  %1058 = vrot.lane.b32.xlu0 %v899_v62, %s2975_s6  ;;  %v928_v18 = vshrl.u32 %v899_v62, 16  ;;  %v931_v19 = vshll.u32 %v899_v62, 16 }
 0x281   : > { %v873_v20 = vmax.f32 %v853_v9, 0.0  ;;  %v854_v21 = vadd.f32 %v3509_v13, %v827_v10  ;;  %v937_v22 = vrot.slane %v935_v14, 7  ;;  %v1007_v23 = vrot.slane %v938_v15, 1 }
 0x282   : > { %v871_v24 = vmax.f32 %v851_v16, 0.0  ;;  %v852_v25 = vadd.f32 %v3509_v13, %v825_v17  ;;  %v1005_v26 = vrot.slane %v931_v19, 1  ;;  %v930_v27 = vrot.slane %v928_v18, 7 }
 0x283   : > { %v874_v28 = vmax.f32 %v854_v21, 0.0  ;;  %v1008_v29 = vor.u32 %v1007_v23, %v935_v14  ;;  %v3575_v30 = vor.u32 %v938_v15, %v937_v22 }
 0x284   : > { %v872_v31 = vmax.f32 %v852_v25, 0.0  ;;  %1060 = vrot.lane.b32.xlu0 %v900_v58, %s2975_s6  ;;  %v2208_v33 = vpop.f32.mrb[12].mxu0  ;;  %v1006_v34 = vor.u32 %v1005_v26, %v928_v18  ;;  %v3578_v36 = vor.u32 %v931_v19, %v930_v27 }
 0x285   : > { %v830_v37 = vmul.f32 %v2208_v33, %v3507_v11  ;;  %v778_v38 = vpop.f32.mrb[13].mxu0  ;;  %v902_v41 = vpack.c.bf16 %v874_v28, %v873_v20  ;;  %v1036_v49 = vsel %vm3583_vm4, %v1008_v29, 0  ;;  %v993_v40 = vsel %vm3653_vm9, 0, %v3575_v30 }
 0x286   : > { %v828_v45 = vmul.f32 %v3507_v11, %v778_v38  ;;  %v2209_v46 = vpop.f32.mrb[14].mxu0  ;;  %v1035_v47 = vsel %vm3583_vm4, %v1006_v34, 0  ;;  %v901_v48 = vpack.c.bf16 %v872_v31, %v871_v24 }
 0x287   : > { %v857_v51 = vadd.f32 %v3509_v13, %v830_v37  ;;  %v831_v52 = vmul.f32 %v2209_v46, %v3507_v11  ;;  %1088 = vrot.lane.b32.xlu1 %v1035_v47, %s2976_s10  ;;  %v781_v53 = vpop.f32.mrb[15].mxu0  ;;  %v949_v55 = vshrl.u32 %v902_v41, 16  ;;  %v952_v56 = vshll.u32 %v902_v41, 16 }
 0x288   : > { %v855_v57 = vadd.f32 %v3509_v13, %v828_v45  ;;  %v829_v58 = vmul.f32 %v3507_v11, %v781_v53  ;;  %1062 = vrot.lane.b32.xlu0 %v901_v48, %s2975_s6  ;;  %v942_v60 = vshrl.u32 %v901_v48, 16  ;;  %v945_v61 = vshll.u32 %v901_v48, 16 }
 0x289   : > { %v877_v62 = vmax.f32 %v857_v51, 0.0  ;;  %v858_v9 = vadd.f32 %v3509_v13, %v831_v52  ;;  %v1011_v10 = vrot.slane %v952_v56, 1  ;;  %v951_v12 = vrot.slane %v949_v55, 7 }
 0x28a   : > { %v875_v14 = vmax.f32 %v855_v57, 0.0  ;;  %v856_v15 = vadd.f32 %v3509_v13, %v829_v58  ;;  %v1009_v16 = vrot.slane %v945_v61, 1  ;;  %v944_v17 = vrot.slane %v942_v60, 7 }
 0x28b   : > { %v878_v18 = vmax.f32 %v858_v9, 0.0  ;;  %1090 = vrot.lane.b32.xlu1 %v1036_v49, %s2976_s10  ;;  %v1012_v19 = vor.u32 %v1011_v10, %v949_v55  ;;  %v3604_v20 = vor.u32 %v952_v56, %v951_v12 }
 0x28c   : > { %v876_v21 = vmax.f32 %v856_v15, 0.0  ;;  %v2212_v22 = vpop.f32.mrb[16].mxu0  ;;  %v1010_v23 = vor.u32 %v1009_v16, %v942_v60  ;;  %v3606_v24 = vor.u32 %v945_v61, %v944_v17 }
 0x28d   : > { %v834_v25 = vmul.f32 %v2212_v22, %v3507_v11  ;;  %v794_v26 = vpop.f32.mrb[17].mxu0  ;;  %v904_v27 = vpack.c.bf16 %v878_v18, %v877_v62  ;;  %v1038_v34 = vsel %vm3583_vm4, %v1012_v19, 0 }
 0x28e   : > { %v832_v29 = vmul.f32 %v3507_v11, %v794_v26  ;;  %v2213_v31 = vpop.f32.mrb[18].mxu0  ;;  %v1037_v33 = vsel %vm3583_vm4, %v1010_v23, 0  ;;  %v903_v37 = vpack.c.bf16 %v876_v21, %v875_v14  ;;  %v1001_v26 = vrot.slane %v917_v50, 1 }
 0x28f   : > { %v861_v38 = vadd.f32 %v3509_v13, %v834_v25  ;;  %v835_v45 = vmul.f32 %v2213_v31, %v3507_v11  ;;  %1064 = vrot.lane.b32.xlu1 %v902_v41, %s2975_s6  ;;  %1092 = vrot.lane.b32.xlu0 %v1037_v33, %s2976_s10  ;;  %v797_v43 = vpop.f32.mrb[19].mxu0  ;;  %v963_v46 = vshrl.u32 %v904_v27, 16  ;;  %v966_v47 = vshll.u32 %v904_v27, 16 }
 0x290   : > { %v859_v48 = vadd.f32 %v3509_v13, %v832_v29  ;;  %v833_v49 = vmul.f32 %v3507_v11, %v797_v43  ;;  %v956_v51 = vshrl.u32 %v903_v37, 16  ;;  %v959_v52 = vshll.u32 %v903_v37, 16 }
 0x291   : > { %v881_v53 = vmax.f32 %v861_v38, 0.0  ;;  %v862_v55 = vadd.f32 %v3509_v13, %v835_v45  ;;  %v1015_v56 = vrot.slane %v966_v47, 1  ;;  %v965_v57 = vrot.slane %v963_v46, 7 }
 0x292   : > { %v879_v58 = vmax.f32 %v859_v48, 0.0  ;;  %v860_v60 = vadd.f32 %v3509_v13, %v833_v49  ;;  %v1013_v41 = vrot.slane %v959_v52, 1  ;;  %v958_v61 = vrot.slane %v956_v51, 7 }
 0x293   : > { %v882_v62 = vmax.f32 %v862_v55, 0.0  ;;  %1094 = vrot.lane.b32.xlu1 %v1038_v34, %s2976_s10  ;;  %1066 = vrot.lane.b32.xlu0 %v903_v37, %s2975_s6  ;;  %v894_v11 = vsel %vm893_vm6, %v881_v53, 0.0  ;;  %v3631_v9 = vor.u32 %v966_v47, %v965_v57  ;;  %v1016_v17 = vor.u32 %v1015_v56, %v963_v46 }
 0x294   : > { %v880_v10 = vmax.f32 %v860_v60, 0.0  ;;  %v1014_v12 = vor.u32 %v1013_v41, %v956_v51  ;;  %v887_v14 = vsel %vm3609_vm5, %v879_v58, 0.0  ;;  %v3635_v15 = vor.u32 %v959_v52, %v958_v61  ;;  %v2517_v60 = vld [vmem:[#allocation11 + $0x10] sm:$0x3f]  }
 0x295   : > { %v895_v13 = vsel %vm893_vm6, %v882_v62, 0.0  ;;  %v1040_v44 = vsel %vm3583_vm4, %v1016_v17, 0  ;;  %v1002_v50 = vor.u32 %v1001_v26, %v914_v42  ;;  %v1003_v45 = vrot.slane %v924_v54, 1 }
 0x296   : > { %v1039_v16 = vsel %vm3583_vm4, %v1014_v12, 0  ;;  %v888_v18 = vsel %vm3609_vm5, %v880_v10, 0.0  ;;  %v905_v19 = vpack.c.bf16 %v895_v13, %v894_v11  ;;  %v994_v61 = vsel %vm3653_vm9, 0, %v3606_v24 }
 0x297   : > { %1068 = vrot.lane.b32.xlu1 %v904_v27, %s2975_s6  ;;  %1096 = vrot.lane.b32.xlu0 %v1039_v16, %s2976_s10  ;;  %v896_v21 = vpack.c.bf16 %v888_v18, %v887_v14  ;;  %v1033_v47 = vsel %vm3583_vm4, %v1002_v50, 0  ;;  %v1004_v42 = vor.u32 %v1003_v45, %v921_v39  ;;  %v996_v16 = vsel %vm3653_vm9, 0, %v3635_v15 }
 0x298   : > { %v970_v22 = vshrl.u32 %v905_v19, 16  ;;  %v973_v29 = vshll.u32 %v905_v19, 16  ;;  %v1400_v50 = vsel %vm1181_vm1, %v2517_v60, 0 }
 0x299   : > { %v907_v23 = vshrl.u32 %v896_v21, 16  ;;  %v910_v25 = vshll.u32 %v896_v21, 16 }
 0x29a   : > { %v972_v28 = vrot.slane %v970_v22, 7  ;;  %v1017_v48 = vrot.slane %v973_v29, 1 }
 0x29b   : > { %1098 = vrot.lane.b32.xlu1 %v1040_v44, %s2976_s10  ;;  %1052 = vrot.lane.b32.xlu0 %v896_v21, %s2975_s6  ;;  %v999_v27 = vrot.slane %v910_v25, 1  ;;  %v909_v31 = vrot.slane %v907_v23, 7 }
 0x29c   : > { %v3651_v33 = vor.u32 %v973_v29, %v972_v28  ;;  %v1018_v54 = vor.u32 %v1017_v48, %v970_v22 }
 0x29d   : > { %v1000_v34 = vor.u32 %v999_v27, %v907_v23  ;;  %v3657_v38 = vor.u32 %v910_v25, %v909_v31 }
 0x29e   : > { %v998_v43 = vsel %vm3653_vm9, 0, %v3651_v33  ;;  %v1041_v49 = vsel %vm3583_vm4, %v1018_v54, 0  ;;  %v1585_v33 = vld [vmem:[#allocation16] sm:$0x3] }
 0x29f   : > { %1054 = vrot.lane.b32.xlu1 %v3523_v35, %s2975_s6  ;;  %v1032_v46 = vsel %vm3583_vm4, %v1000_v34, 0  ;;  %v1034_v35 = vsel %vm3583_vm4, %v1004_v42, 0  ;;  %v989_v15 = vsel %vm3653_vm9, 0, %v3657_v38  ;;  %2324 = vmatprep.subr.msk.bf16.mxu0 %vm1610_vm13, %v1585_v33  ;;  %v1612_v37 = vsel %vm1610_vm13, %v1585_v33, 0 }
 0x2a0   : > { %1082 = vrot.lane.b32.xlu0 %v1032_v46, %s2976_s10  ;;  %v991_v46 = vsel %vm3653_vm9, 0, %v3558_v0 }
 0x2a3   : > { %1084 = vrot.lane.b32.xlu1 %v1033_v47, %s2976_s10 }
 0x2a4   : > { %1056 = vrot.lane.b32.xlu0 %v3520_v32, %s2975_s6  ;;  %v992_v32 = vsel %vm3653_vm9, 0, %v3578_v36  ;;  %v1290_v36 = vsel %vm1181_vm1, %v3554_v63, 0  ;;  %v995_v63 = vsel %vm3653_vm9, 0, %v3604_v20  ;;  %v997_v20 = vsel %vm3653_vm9, 0, %v3631_v9 }
 0x2a5   : > { %v990_v9 = vsel %vm3653_vm9, 0, %v3551_v59 }
 0x2a7   : > { %1086 = vrot.lane.b32.xlu1 %v1034_v35, %s2976_s10 }
 0x2a8   : > { %1070 = vrot.lane.b32.xlu0 %v905_v19, %s2975_s6  ;;  %s2977_s6 = smov [#allocation20]  }
 0x2a9   : > { %s2842_s5 = sshll.u32 %s2977_s6, 4  ;;  %s2843_s5 = int_to_ptr.vmem [resolvable:$false] %s2842_s5 }
 0x2aa   : > { %s2844_s7 = scalar_lea.vmem %s2843_s5, 4096  ;;  %p2845_p1 = scmp.lt.s32.totalorder %s3897_s14, %s2843_s5 }
 0x2ab   : > { %1100 = vrot.lane.b32.xlu1 %v1041_v49, %s2976_s10  ;;  %p2846_p11 = scmp.lt.s32.totalorder %s2844_s7, %s2838_s27 }
 0x2ad   : > { %p2847_p12 = por %p2846_p11, %p2845_p1 }
 0x2af   : > { %p2848_p13 = pnand %p2847_p12, %p2841_p5 }
 0x2f2   : > { %v1059_v39 = vpop.permute.xlu0 %1058 }
 0x2f3   : > { %v1114_v52 = vsel %vm1102_vm10, %v992_v32, %v1059_v39 }
 0x2f6   : > { %v1061_v51 = vpop.permute.xlu0 %1060 }
 0x2f7   : > { %v1117_v56 = vsel %vm1102_vm10, %v993_v40, %v1061_v51  ;;  %v3771_v40 = vld [vmem:[#allocation14] ss:$0 sm:$0xff] }
 0x2f9   : > { %v1089_v53 = vpop.permute.xlu1 %1088 }
 0x2fa   : > { %v3690_v55 = vsel %vm1133_vm11, %v1114_v52, %v1089_v53  ;;  %v1063_v57 = vpop.permute.xlu0 %1062  ;;  %v3769_v52 = vld [vmem:[#allocation13] ss:$0 sm:$0xff] }
 0x2fb   : > { %2220 = vmatprep.mubr.msk.bf16.mxu1 %vm1164_vm12, %v3690_v55  ;;  %v1120_v62 = vsel %vm1102_vm10, %v994_v61, %v1063_v57 }
 0x2fd   : > { %v1091_v58 = vpop.permute.xlu1 %1090 }
 0x2fe   : > { %v1143_v41 = vsel %vm1133_vm11, %v1117_v56, %v1091_v58 }
 0x2ff   : > { %2221 = vmatmul.mubr.msk.bf16.vlgmr.msra.gmra.mrb[0].mxu1 %vm1164_vm12, %v1143_v41 }
 0x300   : > { %2233 = vmatpush3.bf16.msra.mxu1 %v1290_v36 }
 0x301   : > { %v1065_v30 = vpop.permute.xlu1 %1064  ;;  %v1093_v11 = vpop.permute.xlu0 %1092  ;;  %2323 = vmatprep.subr.msk.bf16.mxu1 %vm1181_vm1, %v2517_v60 }
 0x302   : > { %v1145_v10 = vsel %vm1133_vm11, %v1120_v62, %v1093_v11  ;;  %v1123_v12 = vsel %vm1102_vm10, %v995_v63, %v1065_v30 }
 0x303   : > { %2224 = vmatprep.mubr.msk.bf16.mxu1 %vm1164_vm12, %v1145_v10 }
 0x305   : > { %v1095_v14 = vpop.permute.xlu1 %1094  ;;  %v1067_v13 = vpop.permute.xlu0 %1066 }
 0x306   : > { %v1147_v24 = vsel %vm1133_vm11, %v1123_v12, %v1095_v14  ;;  %v1126_v17 = vsel %vm1102_vm10, %v996_v16, %v1067_v13 }
 0x307   : > { %2225 = vmatmul.mubr.msk.bf16.gmra.mrb[4].mxu1 %vm1164_vm12, %v1147_v24 }
 0x309   : > { %v1069_v18 = vpop.permute.xlu1 %1068  ;;  %v1097_v19 = vpop.permute.xlu0 %1096 }
 0x30a   : > { %v1149_v21 = vsel %vm1133_vm11, %v1126_v17, %v1097_v19  ;;  %v1129_v22 = vsel %vm1102_vm10, %v997_v20, %v1069_v18 }
 0x30b   : > { %2228 = vmatprep.mubr.msk.bf16.mxu1 %vm1164_vm12, %v1149_v21 }
 0x30d   : > { %v1099_v23 = vpop.permute.xlu1 %1098  ;;  %v1053_v25 = vpop.permute.xlu0 %1052 }
 0x30e   : > { %v1151_v44 = vsel %vm1133_vm11, %v1129_v22, %v1099_v23  ;;  %v1105_v29 = vsel %vm1102_vm10, %v989_v15, %v1053_v25 }
 0x30f   : > { %2229 = vmatmul.mubr.msk.bf16.gmra.mrb[8].mxu1 %vm1164_vm12, %v1151_v44 }
 0x311   : > { %v1055_v26 = vpop.permute.xlu1 %1054 }
 0x312   : > { %v1083_v28 = vpop.permute.xlu0 %1082  ;;  %v1108_v31 = vsel %vm1102_vm10, %v990_v9, %v1055_v26 }
 0x313   : > { %v1135_v27 = vsel %vm1133_vm11, %v1105_v29, %v1083_v28 }
 0x314   : > { %2234 = vmatprep.mubr.msk.bf16.mxu1 %vm1164_vm12, %v1135_v27 }
 0x315   : > { %v1085_v34 = vpop.permute.xlu1 %1084 }
 0x316   : > { %v1137_v45 = vsel %vm1133_vm11, %v1108_v31, %v1085_v34  ;;  %v1057_v38 = vpop.permute.xlu0 %1056 }
 0x317   : > { %2216 = vmatprep.mubr.msk.bf16.mxu0 %vm1164_vm12, %v1137_v45  ;;  %2235 = vmatmul.mubr.msk.bf16.vlgmr.msra.gmra.mrb[12].mxu1 %vm1164_vm12, %v1137_v45  ;;  %v1111_v59 = vsel %vm1102_vm10, %v991_v46, %v1057_v38 }
 0x318   : > { %2251 = vmatpush3.bf16.msra.mxu1 %v1400_v50 }
 0x319   : > { %v1087_v47 = vpop.permute.xlu1 %1086 }
 0x31a   : > { %v1139_v42 = vsel %vm1133_vm11, %v1111_v59, %v1087_v47  ;;  %v1071_v48 = vpop.permute.xlu0 %1070 }
 0x31b   : > { %2217 = vmatmul.mubr.msk.bf16.vlgmr.msra.gmra.mrb[20].mxu0 %vm1164_vm12, %v1139_v42  ;;  %2238 = vmatprep.mubr.msk.bf16.mxu1 %vm1164_vm12, %v1139_v42  ;;  %v1132_v35 = vsel %vm1102_vm10, %v998_v43, %v1071_v48 }
 0x31c   : > { %2269 = vmatpush3.bf16.msra.mxu0 %v1612_v37 }
 0x31d   : > { %v1101_v54 = vpop.permute.xlu1 %1100 }
 0x31e   : > { %v1153_v0 = vsel %vm1133_vm11, %v1132_v35, %v1101_v54 }
 0x31f   : > { %2239 = vmatmul.mubr.msk.bf16.gmra.mrb[0].mxu1 %vm1164_vm12, %v3690_v55 }
 0x320   : > { %2242 = vmatprep.mubr.msk.bf16.mxu1 %vm1164_vm12, %v1143_v41 }
 0x327   : > { %2243 = vmatmul.mubr.msk.bf16.gmra.mrb[4].mxu1 %vm1164_vm12, %v1145_v10 }
 0x328   : > { %2246 = vmatprep.mubr.msk.bf16.mxu1 %vm1164_vm12, %v1147_v24 }
 0x32f   : > { %2247 = vmatmul.mubr.msk.bf16.gmra.mrb[8].mxu1 %vm1164_vm12, %v1149_v21 }
 0x330   : > { %2252 = vmatprep.mubr.msk.bf16.mxu1 %vm1164_vm12, %v1139_v42 }
 0x337   : > { %2253 = vmatmul.mubr.msk.bf16.vlgmr.msra.gmra.mrb[12].mxu1 %vm1164_vm12, %v3690_v55 }
 0x338   : > { %2256 = vmatprep.mubr.msk.bf16.mxu1 %vm1164_vm12, %v1143_v41 }
 0x33f   : > { %2257 = vmatmul.mubr.msk.bf16.gmra.mrb[0].mxu1 %vm1164_vm12, %v1145_v10 }
 0x340   : > { %2260 = vmatprep.mubr.msk.bf16.mxu1 %vm1164_vm12, %v1147_v24 }
 0x347   : > { %2261 = vmatmul.mubr.msk.bf16.gmra.mrb[4].mxu1 %vm1164_vm12, %v1149_v21 }
 0x348   : > { %2264 = vmatprep.mubr.msk.bf16.mxu1 %vm1164_vm12, %v1151_v44 }
 0x34f   : > { %2265 = vmatmul.mubr.msk.bf16.gmra.mrb[8].mxu1 %vm1164_vm12, %v1153_v0 }
 0x3ee   : > { %v2218_v43 = vpop.f32.mrb[20].mxu0 }
 0x3ef   : > { %v1219_v49 = vpop.f32.mrb[21].mxu0 }
 0x3f0   : > { %v2219_v39 = vpop.f32.mrb[22].mxu0 }
 0x3f1   : > { %v1222_v51 = vpop.f32.mrb[23].mxu0 }
 0x40a   : > { %v2254_v32 = vpop.f32.mrb[12].mxu1 }
 0x40b   : > { %v2288_v53 = vadd.f32 %v2254_v32, %v2218_v43  ;;  %v1436_v55 = vpop.f32.mrb[13].mxu1 }
 0x40c   : > { %v2289_v56 = vadd.f32 %v1436_v55, %v1219_v49  ;;  %v2255_v57 = vpop.f32.mrb[14].mxu1 }
 0x40d   : > { %v1524_v58 = vmul.f32 %v2288_v53, %v3769_v52  ;;  %v2290_v36 = vadd.f32 %v2255_v57, %v2219_v39  ;;  %v1439_v60 = vpop.f32.mrb[15].mxu1 }
 0x40e   : > { %v1522_v41 = vmul.f32 %v2289_v56, %v3769_v52  ;;  %v2291_v61 = vadd.f32 %v1439_v60, %v1222_v51 }
 0x40f   : > { %v1547_v62 = vadd.f32 %v3771_v40, %v1524_v58  ;;  %v1525_v30 = vmul.f32 %v2290_v36, %v3769_v52 }
 0x410   : > { %v1545_v11 = vadd.f32 %v3771_v40, %v1522_v41  ;;  %v1523_v10 = vmul.f32 %v2291_v61, %v3769_v52 }
 0x411   : > { %v1548_v63 = vadd.f32 %v3771_v40, %v1525_v30  ;;  %v1563_v13 = vmax.f32 %v1547_v62, 0.0 }
 0x412   : > { %v1546_v12 = vadd.f32 %v3771_v40, %v1523_v10  ;;  %v2258_v14 = vpop.f32.mrb[0].mxu1  ;;  %v1561_v18 = vmax.f32 %v1545_v11, 0.0 }
 0x413   : > { %v1564_v24 = vmax.f32 %v1548_v63, 0.0  ;;  %v1528_v16 = vmul.f32 %v2258_v14, %v3769_v52  ;;  %v1452_v17 = vpop.f32.mrb[1].mxu1 }
 0x414   : > { %v1562_v19 = vmax.f32 %v1546_v12, 0.0  ;;  %v1526_v21 = vmul.f32 %v3769_v52, %v1452_v17  ;;  %v2259_v20 = vpop.f32.mrb[2].mxu1 }
 0x415   : > { %v1578_v22 = vpack.c.bf16 %v1564_v24, %v1563_v13  ;;  %v1551_v23 = vadd.f32 %v3771_v40, %v1528_v16  ;;  %v1529_v25 = vmul.f32 %v2259_v20, %v3769_v52  ;;  %v1455_v44 = vpop.f32.mrb[3].mxu1  ;;  %v1759_v20 = vunpack.c.l.bf16 %v3467_v2 }
 0x416   : > { %v1577_v15 = vpack.c.bf16 %v1562_v19, %v1561_v18  ;;  %v1549_v26 = vadd.f32 %v3771_v40, %v1526_v21  ;;  %v1527_v29 = vmul.f32 %v3769_v52, %v1455_v44  ;;  %v3815_v21 = vld [vmem:[#allocation19] ss:$0 sm:$0xff] }
 0x417   : > { %v1552_v28 = vadd.f32 %v3771_v40, %v1529_v25  ;;  %v1567_v9 = vmax.f32 %v1551_v23, 0.0  ;;  %v1757_v23 = vunpack.c.l.bf16 %v3464_v1 }
 0x418   : > { %v1550_v27 = vadd.f32 %v3771_v40, %v1527_v29  ;;  %2270 = vmatprep.mubr.msk.bf16.mxu0 %vm1102_vm10, %v1577_v15  ;;  %v1565_v34 = vmax.f32 %v1549_v26, 0.0  ;;  %v1760_v29 = vunpack.c.h.bf16 %v3467_v2 }
 0x419   : > { %v1568_v31 = vmax.f32 %v1552_v28, 0.0  ;;  %2271 = vmatmul.mubr.msk.bf16.vlgmr.msra.gmra.mrb[24].mxu0 %vm1102_vm10, %v1578_v22 }
 0x41a   : > { %v1566_v50 = vmax.f32 %v1550_v27, 0.0  ;;  %v2262_v45 = vpop.f32.mrb[4].mxu1  ;;  %v1758_v27 = vunpack.c.h.bf16 %v3464_v1 }
 0x41b   : > { %v1580_v38 = vpack.c.bf16 %v1568_v31, %v1567_v9  ;;  %v1532_v46 = vmul.f32 %v2262_v45, %v3769_v52  ;;  %v1468_v59 = vpop.f32.mrb[5].mxu1 }
 0x41c   : > { %v1579_v47 = vpack.c.bf16 %v1566_v50, %v1565_v34  ;;  %v1530_v42 = vmul.f32 %v3769_v52, %v1468_v59  ;;  %v2263_v48 = vpop.f32.mrb[6].mxu1 }
 0x41d   : > { %v1555_v35 = vadd.f32 %v3771_v40, %v1532_v46  ;;  %v1533_v54 = vmul.f32 %v2263_v48, %v3769_v52  ;;  %v1471_v0 = vpop.f32.mrb[7].mxu1 }
 0x41e   : > { %v1553_v33 = vadd.f32 %v3771_v40, %v1530_v42  ;;  %v1531_v37 = vmul.f32 %v3769_v52, %v1471_v0  ;;  %2274 = vmatprep.mubr.msk.bf16.mxu0 %vm1102_vm10, %v1579_v47 }
 0x41f   : > { %v1556_v43 = vadd.f32 %v3771_v40, %v1533_v54  ;;  %v1571_v39 = vmax.f32 %v1555_v35, 0.0  ;;  %v1763_v35 = vunpack.c.l.bf16 %v3479_v4 }
 0x420   : > { %v1554_v49 = vadd.f32 %v3771_v40, %v1531_v37  ;;  %v1569_v32 = vmax.f32 %v1553_v33, 0.0  ;;  %v1761_v37 = vunpack.c.l.bf16 %v3470_v3 }
 0x421   : > { %v1572_v51 = vmax.f32 %v1556_v43, 0.0  ;;  %2275 = vmatmul.mubr.msk.bf16.gmra.mrb[28].mxu0 %vm1102_vm10, %v1580_v38 }
 0x422   : > { %v1570_v53 = vmax.f32 %v1554_v49, 0.0  ;;  %v2266_v55 = vpop.f32.mrb[8].mxu1 }
 0x423   : > { %v1582_v56 = vpack.c.bf16 %v1572_v51, %v1571_v39  ;;  %v1536_v57 = vmul.f32 %v2266_v55, %v3769_v52  ;;  %v1484_v58 = vpop.f32.mrb[9].mxu1  ;;  %v1764_v51 = vunpack.c.h.bf16 %v3479_v4 }
 0x424   : > { %v1581_v36 = vpack.c.bf16 %v1570_v53, %v1569_v32  ;;  %v1534_v60 = vmul.f32 %v3769_v52, %v1484_v58  ;;  %v2267_v41 = vpop.f32.mrb[10].mxu1 }
 0x425   : > { %v1559_v61 = vadd.f32 %v3771_v40, %v1536_v57  ;;  %v1537_v62 = vmul.f32 %v2267_v41, %v3769_v52  ;;  %v1487_v30 = vpop.f32.mrb[11].mxu1 }
 0x426   : > { %v1557_v11 = vadd.f32 %v3771_v40, %v1534_v60  ;;  %v1535_v10 = vmul.f32 %v3769_v52, %v1487_v30  ;;  %2278 = vmatprep.mubr.msk.bf16.mxu0 %vm1102_vm10, %v1581_v36  ;;  %v3813_v52 = vld [vmem:[#allocation17] ss:$0 sm:$0xff] }
 0x427   : > { %v1560_v63 = vadd.f32 %v3771_v40, %v1537_v62  ;;  %v1575_v14 = vmax.f32 %v1559_v61, 0.0 }
 0x428   : > { %v1558_v12 = vadd.f32 %v3771_v40, %v1535_v10  ;;  %v1573_v24 = vmax.f32 %v1557_v11, 0.0 }
 0x429   : > { %v1576_v13 = vmax.f32 %v1560_v63, 0.0  ;;  %2279 = vmatmul.mubr.msk.bf16.gmra.mrb[32].mxu0 %vm1102_vm10, %v1582_v56  ;;  %v1762_v56 = vunpack.c.h.bf16 %v3470_v3  ;;  %v1767_v3 = vunpack.c.l.bf16 %v3489_v6 }
 0x42a   : > { %v1574_v16 = vmax.f32 %v1558_v12, 0.0 }
 0x42b   : > { %v1584_v17 = vpack.c.bf16 %v1576_v13, %v1575_v14  ;;  %v1765_v13 = vunpack.c.l.bf16 %v3482_v5 }
 0x42c   : > { %v1583_v18 = vpack.c.bf16 %v1574_v16, %v1573_v24 }
 0x42e   : > { %2282 = vmatprep.mubr.msk.bf16.mxu0 %vm1102_vm10, %v1583_v18  ;;  %v1768_v18 = vunpack.c.h.bf16 %v3489_v6 }
 0x431   : > { %2283 = vmatmul.mubr.msk.bf16.gmra.mrb[36].mxu0 %vm1102_vm10, %v1584_v17 }
 0x4ec   : > { %v2272_v19 = vpop.f32.mrb[24].mxu0 }
 0x4ed   : > { %v1720_v40 = vmul.f32 %v2272_v19, %v3813_v52  ;;  %v1648_v22 = vpop.f32.mrb[25].mxu0 }
 0x4ee   : > { %v1718_v25 = vmul.f32 %v3813_v52, %v1648_v22  ;;  %v2273_v44 = vpop.f32.mrb[26].mxu0  ;;  %v1766_v22 = vunpack.c.h.bf16 %v3482_v5 }
 0x4ef   : > { %v1743_v15 = vadd.f32 %v3815_v21, %v1720_v40  ;;  %v1721_v26 = vmul.f32 %v2273_v44, %v3813_v52  ;;  %v1651_v28 = vpop.f32.mrb[27].mxu0 }
 0x4f0   : > { %v1741_v9 = vadd.f32 %v3815_v21, %v1718_v25  ;;  %v1719_v31 = vmul.f32 %v3813_v52, %v1651_v28 }
 0x4f1   : > { %v1775_v34 = vadd.f32 %v1759_v20, %v1743_v15  ;;  %v1744_v50 = vadd.f32 %v3815_v21, %v1721_v26 }
 0x4f2   : > { %v1773_v45 = vadd.f32 %v1757_v23, %v1741_v9  ;;  %v1742_v38 = vadd.f32 %v3815_v21, %v1719_v31  ;;  %v1771_v31 = vunpack.c.l.bf16 %v3499_v8 }
 0x4f3   : > { %v1791_v46 = vmax.f32 %v1775_v34, 0.0  ;;  %v1776_v59 = vadd.f32 %v1760_v29, %v1744_v50 }
 0x4f4   : > { %v1789_v47 = vmax.f32 %v1773_v45, 0.0  ;;  %v1774_v42 = vadd.f32 %v1758_v27, %v1742_v38  ;;  %v2276_v48 = vpop.f32.mrb[28].mxu0  ;;  %v1769_v38 = vunpack.c.l.bf16 %v3492_v7 }
 0x4f5   : > { %1807 = vst.msk [vmem:[%s3830_s3 + $0x10] sm:$0xff] %vm665_vm0, %v1791_v46  ;;  %v1792_v1 = vmax.f32 %v1776_v59, 0.0  ;;  %v1724_v2 = vmul.f32 %v2276_v48, %v3813_v52  ;;  %v1664_v54 = vpop.f32.mrb[29].mxu0 }
 0x4f6   : > { %1805 = vst.msk [vmem:[%s3830_s3] sm:$0xff] %vm665_vm0, %v1789_v47  ;;  %v1790_v0 = vmax.f32 %v1774_v42, 0.0  ;;  %v1722_v33 = vmul.f32 %v3813_v52, %v1664_v54  ;;  %v2277_v43 = vpop.f32.mrb[30].mxu0  ;;  %v1772_v42 = vunpack.c.h.bf16 %v3499_v8 }
 0x4f7   : > { %1808 = vst.msk [vmem:[%s3830_s3 + $0x18] sm:$0xff] %vm665_vm0, %v1792_v1  ;;  %v1747_v49 = vadd.f32 %v3815_v21, %v1724_v2  ;;  %v1725_v39 = vmul.f32 %v2277_v43, %v3813_v52  ;;  %v1667_v32 = vpop.f32.mrb[31].mxu0 }
 0x4f8   : > { %1806 = vst.msk [vmem:[%s3830_s3 + $0x8] sm:$0xff] %vm665_vm0, %v1790_v0  ;;  %v1745_v53 = vadd.f32 %v3815_v21, %v1722_v33  ;;  %v1723_v55 = vmul.f32 %v3813_v52, %v1667_v32 }
 0x4f9   : > { %v1779_v57 = vadd.f32 %v1763_v35, %v1747_v49  ;;  %v1748_v58 = vadd.f32 %v3815_v21, %v1725_v39  ;;  %v1770_v35 = vunpack.c.h.bf16 %v3492_v7 }
 0x4fa   : > { %v1777_v36 = vadd.f32 %v1761_v37, %v1745_v53  ;;  %v1746_v60 = vadd.f32 %v3815_v21, %v1723_v55 }
 0x4fb   : > { %v1795_v41 = vmax.f32 %v1779_v57, 0.0  ;;  %v1780_v61 = vadd.f32 %v1764_v51, %v1748_v58 }
 0x4fc   : > { %v1793_v4 = vmax.f32 %v1777_v36, 0.0  ;;  %v1778_v62 = vadd.f32 %v1762_v56, %v1746_v60  ;;  %v2280_v30 = vpop.f32.mrb[32].mxu0 }
 0x4fd   : > { %1811 = vst.msk [vmem:[%s3830_s3 + $0x30] sm:$0xff] %vm665_vm0, %v1795_v41  ;;  %v1796_v11 = vmax.f32 %v1780_v61, 0.0  ;;  %v1728_v10 = vmul.f32 %v2280_v30, %v3813_v52  ;;  %v1680_v63 = vpop.f32.mrb[33].mxu0 }
 0x4fe   : > { %1809 = vst.msk [vmem:[%s3830_s3 + $0x20] sm:$0xff] %vm665_vm0, %v1793_v4  ;;  %v1794_v12 = vmax.f32 %v1778_v62, 0.0  ;;  %v1726_v14 = vmul.f32 %v3813_v52, %v1680_v63  ;;  %v2281_v24 = vpop.f32.mrb[34].mxu0 }
 0x4ff   : > { %1812 = vst.msk [vmem:[%s3830_s3 + $0x38] sm:$0xff] %vm665_vm0, %v1796_v11  ;;  %v1751_v16 = vadd.f32 %v3815_v21, %v1728_v10  ;;  %v1729_v17 = vmul.f32 %v2281_v24, %v3813_v52  ;;  %v1683_v19 = vpop.f32.mrb[35].mxu0 }
 0x500   : > { %1810 = vst.msk [vmem:[%s3830_s3 + $0x28] sm:$0xff] %vm665_vm0, %v1794_v12  ;;  %v1749_v40 = vadd.f32 %v3815_v21, %v1726_v14  ;;  %v1727_v20 = vmul.f32 %v3813_v52, %v1683_v19 }
 0x501   : > { %v1783_v23 = vadd.f32 %v1767_v3, %v1751_v16  ;;  %v1752_v25 = vadd.f32 %v3815_v21, %v1729_v17 }
 0x502   : > { %v1781_v44 = vadd.f32 %v1765_v13, %v1749_v40  ;;  %v1750_v15 = vadd.f32 %v3815_v21, %v1727_v20 }
 0x503   : > { %v1799_v26 = vmax.f32 %v1783_v23, 0.0  ;;  %v1784_v6 = vadd.f32 %v1768_v18, %v1752_v25 }
 0x504   : > { %v1797_v29 = vmax.f32 %v1781_v44, 0.0  ;;  %v1782_v28 = vadd.f32 %v1766_v22, %v1750_v15  ;;  %v2284_v27 = vpop.f32.mrb[36].mxu0 }
 0x505   : > { %1815 = vst.msk [vmem:[%s3830_s3 + $0x50] sm:$0xff] %vm665_vm0, %v1799_v26  ;;  %v1800_v9 = vmax.f32 %v1784_v6, 0.0  ;;  %v1732_v5 = vmul.f32 %v2284_v27, %v3813_v52  ;;  %v1696_v34 = vpop.f32.mrb[37].mxu0 }
 0x506   : > { %1813 = vst.msk [vmem:[%s3830_s3 + $0x40] sm:$0xff] %vm665_vm0, %v1797_v29  ;;  %v1798_v50 = vmax.f32 %v1782_v28, 0.0  ;;  %v1730_v45 = vmul.f32 %v3813_v52, %v1696_v34  ;;  %v2285_v46 = vpop.f32.mrb[38].mxu0 }
 0x507   : > { %1816 = vst.msk [vmem:[%s3830_s3 + $0x58] sm:$0xff] %vm665_vm0, %v1800_v9  ;;  %v1755_v59 = vadd.f32 %v3815_v21, %v1732_v5  ;;  %v1733_v47 = vmul.f32 %v2285_v46, %v3813_v52  ;;  %v1699_v48 = vpop.f32.mrb[39].mxu0 }
 0x508   : > { %1814 = vst.msk [vmem:[%s3830_s3 + $0x48] sm:$0xff] %vm665_vm0, %v1798_v50  ;;  %v1753_v1 = vadd.f32 %v3815_v21, %v1730_v45  ;;  %v1731_v2 = vmul.f32 %v3813_v52, %v1699_v48 }
 0x509   : > { %v1787_v54 = vadd.f32 %v1771_v31, %v1755_v59  ;;  %v1756_v0 = vadd.f32 %v3815_v21, %v1733_v47 }
 0x50a   : > { %v1785_v33 = vadd.f32 %v1769_v38, %v1753_v1  ;;  %v1754_v8 = vadd.f32 %v3815_v21, %v1731_v2 }
 0x50b   : > { %v1803_v37 = vmax.f32 %v1787_v54, 0.0  ;;  %v1788_v43 = vadd.f32 %v1772_v42, %v1756_v0 }
 0x50c   : > { %v1801_v49 = vmax.f32 %v1785_v33, 0.0  ;;  %v1786_v52 = vadd.f32 %v1770_v35, %v1754_v8 }
 0x50d   : > { %1819 = vst.msk [vmem:[%s3830_s3 + $0x70] sm:$0xff] %vm665_vm0, %v1803_v37  ;;  %v1804_v7 = vmax.f32 %v1788_v43, 0.0 }
 0x50e   : > { %1817 = vst.msk [vmem:[%s3830_s3 + $0x60] sm:$0xff] %vm665_vm0, %v1801_v49  ;;  %v1802_v39 = vmax.f32 %v1786_v52, 0.0 }
 0x50f   : > { %1820 = vst.msk [vmem:[%s3830_s3 + $0x78] sm:$0xff] %vm665_vm0, %v1804_v7 }
 0x510   : > { %1818 = vst.msk [vmem:[%s3830_s3 + $0x68] sm:$0xff] %vm665_vm0, %v1802_v39 }
 0x511   : > { %2851 = shalt.err (!%p2848_p13)
}
 0x512   : > { %s2852_s25 = scalar_lea.hbm %s3904_s1, 2048  ;;  %s2856_s11 = scalar_lea.hbm %s4053_s30, 8192 }
 0x513   : > { %p2853_p4 = scmp.ne.s32.totalorder %s3904_s1, %s2852_s25  ;;  %p2857_p8 = scmp.lt.u32.totalorder %s3904_s1, %s4053_s30 }
 0x514   : > { %p2858_p2 = scmp.lt.u32.totalorder %s2856_s11, %s2852_s25  ;;  %p2860_p10 = scmp.lt.u32.totalorder %s2852_s25, %s3904_s1 }
 0x515   : > { %p2854_p0 = pnand %p2853_p4, %p4054_p3 }
 0x516   : > { %p2859_p9 = por %p2858_p2, %p2857_p8 }
 0x517   : > { %p2855_p6 = pneg %p2854_p0 }
 0x518   : > { %p2861_p7 = por %p2860_p10, %p2859_p9 }
 0x51a   : > { %p2862_p5 = pnand %p2861_p7, %p2855_p6 }
 0x51c   : > { %2865 = shalt.err (!%p2862_p5)
}
 0x51d   : > { %s2978_s9 = smov 128  }
 0x51e   : > { %2365 = dma.vmem_to_hbm [thread:$0]  (%p4054_p3), %s3897_s14, 2048, %s3904_s1, %s1822_s15, %s2978_s9, %s2978_s9, %s2976_s10  }
 0x51f PF: > { %p2425_p1 = scmp.ge.s32.totalorder %s2960_s24, 2  ;;  %s1853_s21 = sand.u32 1, %s2932_s17  }
 0x520   : > { %p4055_p11 = scmp.ne.s32.totalorder %s4024_s2, 0  ;;  %s1854_s20 = scalar_lea.sflag [#allocation4], %s1853_s21 }
 0x522   : > { %p2403_p12 = pnand %p2425_p1, %p4055_p11 }
 0x524   : > { %2927 = dma.done.wait (!%p2403_p12), %s1854_s20, 2048  }
 0x525   : > { %2929 = vsyncadd (!%p2403_p12), %s1854_s20, 4294965248  ;;  %s34_s24 = sadd.s32 1, %s2960_s24   ;;  %s4056_s17 = smov %s2936_s18 }
 0x526   : > { %p31_p13 = scmp.ge.s32.totalorder %s34_s24, 6   ;;  %s4057_s18 = smov %s2940_s19 }
 0x527   : > { %s4058_s19 = smov %s3332_s16  ;;  %s4059_s20 = smov %s2952_s22 }
 0x528   : > { %s4060_s21 = smov %s2956_s23  ;;  %s4061_s22 = smov %s4064_s28 }
 0x529   : > { %s4062_s23 = smov %s4068_s29  ;;  %33 = sbr.rel (!%p31_p13) target bundleno = 26 (0x1a), region = 160 }
 0x530   :  { %1859 = vsyncpa [#allocation3], 1 }
 0x531   :  { %1861 = vsyncpa [#allocation3 + $0x1], 1 }
 0x532   :  { %1862 = vsyncpa [#allocation6], 1 }
 0x533   :  { %1864 = vsyncpa [#allocation6 + $0x1], 1 }
 0x534   :  { %1865 = vsyncpa [#allocation9], 1 }
 0x535   :  { %1866 = vsyncpa [#allocation12], 1 }
 0x536   :  { %1867 = vsyncpa [#allocation15], 1 }
 0x537   :  { %1868 = vsyncpa [#allocation18], 1 }
 0x538   :  { %1869 = vsyncpa [#allocation4], 1 }
 0x539   :  { %1871 = vsyncpa [#allocation4 + $0x1], 1 }

</bundles_post_ra>
